<compile_context>
chip_gen: v5e
topology: v5e:2x2
jax: 0.10.0
libtpu: 0.0.40
codegen_flags: <defaults>
</compile_context>

<pallas_src>
import math

import jax
import jax.numpy as jnp
from jax.experimental import pallas as pl
from jax.experimental.pallas import tpu as pltpu


# ---------------------------------------------------------------------------
# Kernels
# ---------------------------------------------------------------------------
def gcn_head_kernel(inp_ref, a_ref, w1_ref, w2_ref, xt_ref):
    """gen_adj + gc1 + LeakyReLU(0.2) + gc2, output pre-transposed.

    inp_ref: (nc_pad, in_pad)   word embeddings (inp[0], zero-padded)
    a_ref  : (nc_pad, nc_pad)   raw adjacency parameter A (zero-padded)
    w1_ref : (in_pad, hid1)     gc1.weight (zero-padded rows)
    w2_ref : (hid1, hid2)       gc2.weight
    xt_ref : (hid2, nc_pad)     classifier x.T (so consumer does (M,K)x(K,N))
    """
    A = a_ref[...]
    # gen_adj: D = diag(A.sum(1) ** -0.5); adj = (A @ D).T @ D = D @ A.T @ D.
    rowsum = jnp.sum(A, axis=1, keepdims=True)               # (nc_pad, 1)
    # Padded rows sum to 0; the guard yields a finite scale that is then
    # multiplied by A's zeros (intentional divergence limited to padding).
    d = jax.lax.rsqrt(jnp.maximum(rowsum, 1e-12))
    adj = d * A.T * d.reshape(1, -1)                         # tiny, hoisted once

    # gc1: support = inp @ W1 ; x = adj @ support
    support1 = jnp.dot(inp_ref[...], w1_ref[...],
                       preferred_element_type=jnp.float32)
    x = jnp.dot(adj, support1, preferred_element_type=jnp.float32)
    # LeakyReLU(0.2)
    x = jnp.where(x > 0, x, 0.2 * x)
    # gc2: support = x @ W2 ; x = adj @ support
    support2 = jnp.dot(x, w2_ref[...], preferred_element_type=jnp.float32)
    x = jnp.dot(adj, support2, preferred_element_type=jnp.float32)  # (nc_pad, hid2)
    # x = x.transpose(0, 1)
    xt_ref[...] = x.T


def pool_classify_kernel(x_ref, xt_ref, o_ref):
    """MaxPool2d(14,14) (== global spatial max on the 14x14 map) fused with
    the classifier matmul pooled @ x.T.

    x_ref : (Bb, C, H*W)     feature block (whole channel dim per step)
    xt_ref: (C, nc_pad)      classifier x.T, VMEM-resident (constant index map)
    o_ref : (Bb, 1, nc_pad)  per-batch logits
    """
    pooled = jnp.max(x_ref[...], axis=-1)                    # (Bb, C)
    logits = jnp.dot(pooled, xt_ref[...],
                     preferred_element_type=jnp.float32)     # (Bb, nc_pad)
    # Static per-row stores into the (Bb, 1, nc_pad) output block; Bb is small
    # (<= ~16) so the unrolled sublane extracts/stores are negligible.
    for r in range(o_ref.shape[0]):
        o_ref[r] = logits[r:r + 1, :].astype(o_ref.dtype)


# ---------------------------------------------------------------------------
# Wrapper helpers
# ---------------------------------------------------------------------------
def _round_up(x, m):
    return ((x + m - 1) // m) * m


def _vmem_plan():
    """(pooling-kernel buffer budget, vmem_limit_bytes) per TPU generation."""
    try:
        kind = jax.devices()[0].device_kind.lower()
    except Exception:  # pragma: no cover - defensive
        kind = ""
    if "v5" in kind or "v6" in kind:
        # 128 MiB physical VMEM parts: larger tiles get closer to the HBM
        # roofline and cut grid-step count.
        return 48 * 1024 * 1024, 64 * 1024 * 1024
    # v7x has 64 MiB physical VMEM per TensorCore; stay conservative.  This is
    # also the fallback for unknown device kinds.
    return 26 * 1024 * 1024, 40 * 1024 * 1024


def _pick_batch_block(batch, per_row_bytes, resident_bytes, budget_bytes):
    """Largest divisor of `batch` whose double-buffered feature block fits the
    VMEM budget; prefers >= 2 grid steps (pipelining / v7x megacore)."""
    avail = budget_bytes - resident_bytes
    max_rows = max(1, avail // (2 * per_row_bytes))
    cap = max_rows if batch < 2 else min(max_rows, max(1, batch // 2))
    bb = 1
    for cand in range(1, batch + 1):
        if batch % cand == 0 and cand <= cap:
            bb = cand
    return bb


# ---------------------------------------------------------------------------
# Forward
# ---------------------------------------------------------------------------
def gcn_classifier_xt(inp, A, w1, w2):
    """Classifier matrix x.T, padded to (hid2, nc_pad).  Parameter-only: in a
    serving loop compute this once (hoisted) and reuse it across batches."""
    nc = A.shape[0]
    in_ch = inp.shape[-1]
    hid1 = w1.shape[1]
    hid2 = w2.shape[1]

    # Lane/MXU-friendly padding of the tiny GCN operands (sliced off later).
    nc_pad = _round_up(nc, 128)
    in_pad = _round_up(in_ch, 128)

    inp0 = inp[0].astype(jnp.float32)                          # inp = inp[0]
    inp_p = jnp.zeros((nc_pad, in_pad), jnp.float32).at[:nc, :in_ch].set(inp0)
    A_p = jnp.zeros((nc_pad, nc_pad), jnp.float32).at[:nc, :nc].set(
        A.astype(jnp.float32))
    w1_p = jnp.zeros((in_pad, hid1), jnp.float32).at[:in_ch, :].set(
        w1.astype(jnp.float32))
    w2_f = w2.astype(jnp.float32)

    vmem = pl.BlockSpec(memory_space=pltpu.MemorySpace.VMEM)
    xt = pl.pallas_call(
        gcn_head_kernel,
        out_shape=jax.ShapeDtypeStruct((hid2, nc_pad), jnp.float32),
        in_specs=[vmem] * 4,
        out_specs=vmem,
        # At real model sizes (in_pad=384, hid1=1024, hid2=2048) the single
        # block needs ~13-14 MiB — above v5e's 16 MiB default scoped VMEM, so
        # set the limit explicitly (safe on v6e/v7x as well).
        compiler_params=pltpu.CompilerParams(
            vmem_limit_bytes=32 * 1024 * 1024),
    )(inp_p, A_p, w1_p, w2_f)
    return xt, nc


def pool_and_classify(feature, xt, nc):
    """feature: (B, C, 14, 14) backbone output (NCHW); xt: (C, nc_pad)."""
    B, C, H, W = feature.shape
    assert (H, W) == (14, 14), "MaxPool2d(14,14) expects the 14x14 backbone map"
    hw = H * W
    nc_pad = xt.shape[1]
    assert xt.shape[0] == C, "gc2 output dim must match backbone feature dim"

    # bf16 feature maps are accepted as-is (halves HBM traffic in this
    # bandwidth-bound pass); xt is cast to match so the MXU runs it natively.
    xt_c = xt.astype(feature.dtype)

    feat3 = feature.reshape(B, C, hw)  # channels on sublanes, H*W on lanes

    budget, vmem_limit = _vmem_plan()
    per_row = C * hw * feat3.dtype.itemsize
    resident = C * nc_pad * xt_c.dtype.itemsize * 2   # xt buffers (conservative)
    bb = _pick_batch_block(B, per_row, resident, budget)

    out3 = pl.pallas_call(
        pool_classify_kernel,
        out_shape=jax.ShapeDtypeStruct((B, 1, nc_pad), jnp.float32),
        grid_spec=pltpu.PrefetchScalarGridSpec(
            num_scalar_prefetch=0,
            grid=(B // bb,),
            in_specs=[
                # Whole-C, batch-blocked feature tile.
                pl.BlockSpec((bb, C, hw), lambda b: (b, 0, 0)),
                # Constant block index -> DMA'd once, VMEM-resident for the
                # whole grid instead of being re-fetched per batch block.
                pl.BlockSpec((C, nc_pad), lambda b: (0, 0)),
            ],
            out_specs=pl.BlockSpec((bb, 1, nc_pad), lambda b: (b, 0, 0)),
        ),
        compiler_params=pltpu.CompilerParams(
            dimension_semantics=("parallel",),
            vmem_limit_bytes=vmem_limit),
    )(feat3, xt_c)

    return out3[:, 0, :nc]


def gcn_resnet_forward(feature, inp, A, w1, w2):
    """Full GCNResnet.forward given the backbone feature map."""
    xt, nc = gcn_classifier_xt(inp, A, w1, w2)
    return pool_and_classify(feature, xt, nc)


# ---------------------------------------------------------------------------
# Pure-JAX reference (mirrors the PyTorch forward)
# ---------------------------------------------------------------------------
def reference_forward(feature, inp, A, w1, w2):
    B, C, H, W = feature.shape
    pooled = jnp.max(feature.reshape(B, C, H * W), axis=-1)
    d = jnp.power(A.sum(1), -0.5)
    D = jnp.diag(d)
    adj = (A @ D).T @ D
    x = adj @ (inp[0] @ w1)
    x = jnp.where(x > 0, x, 0.2 * x)
    x = adj @ (x @ w2)
    return pooled @ x.T


# ---------------------------------------------------------------------------
if __name__ == "__main__":
    # Small shapes consistent with the module structure:
    #   num_classes=8, in_channel=32 (vs 300), gc1: 32->64 (vs 300->1024),
    #   gc2: 64->128 (vs 1024->2048), backbone feat_dim=128 (vs 2048),
    #   feature map 14x14 (matches MaxPool2d(14, 14)).
    B, feat_dim, Hm, Wm = 2, 128, 14, 14
    num_classes, in_channel, hid1, hid2 = 8, 32, 64, feat_dim

    key = jax.random.PRNGKey(0)
    k_feat, k_inp, k_adj, k_w1, k_w2 = jax.random.split(key, 5)

    feature = jax.random.normal(k_feat, (B, feat_dim, Hm, Wm), jnp.float32)
    inp = jax.random.normal(k_inp, (1, num_classes, in_channel), jnp.float32)

    # GraphConvolution.reset_parameters: uniform(-stdv, stdv), stdv=1/sqrt(out)
    stdv1 = 1.0 / math.sqrt(hid1)
    stdv2 = 1.0 / math.sqrt(hid2)
    w1 = jax.random.uniform(k_w1, (in_channel, hid1), jnp.float32,
                            minval=-stdv1, maxval=stdv1)
    w2 = jax.random.uniform(k_w2, (hid1, hid2), jnp.float32,
                            minval=-stdv2, maxval=stdv2)

    # Synthetic positive adjacency parameter (gen_A stand-in).
    A = (jax.random.uniform(k_adj, (num_classes, num_classes), jnp.float32,
                            minval=0.1, maxval=1.0)
         + jnp.eye(num_classes, dtype=jnp.float32))

    out = jax.block_until_ready(
        jax.jit(gcn_resnet_forward)(feature, inp, A, w1, w2))

    ref = reference_forward(feature, inp, A, w1, w2)
    assert out.shape == (B, num_classes)
    assert jnp.allclose(out, ref, rtol=1e-3, atol=1e-3), (out, ref)

    print("KERNEL_OK")
</pallas_src>

<mosaic_0001>
module attributes {stable_mosaic.version = 11 : i64} {
  func.func @gcn_head_kernel(%arg0: memref<128x128xf32, #tpu.memory_space<vmem>>, %arg1: memref<128x128xf32, #tpu.memory_space<vmem>>, %arg2: memref<128x64xf32, #tpu.memory_space<vmem>>, %arg3: memref<64x128xf32, #tpu.memory_space<vmem>>, %arg4: memref<128x128xf32, #tpu.memory_space<vmem>>) attributes {dimension_semantics = [], scalar_prefetch = 0 : i64, scratch_operands = 0 : i64, tpu.core_type = #tpu.core_type<tc>} {
    %c0 = arith.constant 0 : index
    %c0_0 = arith.constant 0 : index
    %0 = vector.load %arg1[%c0, %c0_0] : memref<128x128xf32, #tpu.memory_space<vmem>>, vector<128x128xf32>
    %cst = arith.constant dense<0.000000e+00> : vector<128xf32>
    %1 = vector.multi_reduction <add>, %0, %cst [1] : vector<128x128xf32> to vector<128xf32>
    %2 = vector.shape_cast %1 : vector<128xf32> to vector<128x1xf32>
    %cst_1 = arith.constant 9.99999996E-13 : f32
    %3 = vector.broadcast %cst_1 : f32 to vector<128x1xf32>
    %4 = arith.maximumf %2, %3 : vector<128x1xf32>
    %5 = math.rsqrt %4 : vector<128x1xf32>
    %6 = tpu.transpose %0, [1, 0] : vector<128x128xf32> -> vector<128x128xf32>
    %7 = vector.broadcast %5 : vector<128x1xf32> to vector<128x128xf32>
    %8 = arith.mulf %7, %6 : vector<128x128xf32>
    %9 = vector.shape_cast %5 : vector<128x1xf32> to vector<1x128xf32>
    %10 = vector.broadcast %9 : vector<1x128xf32> to vector<128x128xf32>
    %11 = arith.mulf %8, %10 : vector<128x128xf32>
    %c0_2 = arith.constant 0 : index
    %c0_3 = arith.constant 0 : index
    %12 = vector.load %arg0[%c0_2, %c0_3] : memref<128x128xf32, #tpu.memory_space<vmem>>, vector<128x128xf32>
    %c0_4 = arith.constant 0 : index
    %c0_5 = arith.constant 0 : index
    %13 = vector.load %arg2[%c0_4, %c0_5] : memref<128x64xf32, #tpu.memory_space<vmem>>, vector<128x64xf32>
    %cst_6 = arith.constant dense<0.000000e+00> : vector<128x64xf32>
    %14 = tpu.matmul %12, %13, %cst_6 {dimension_numbers = #tpu.dot_dimension_numbers<[1], [0], [0], [1], [0, 0, 1, 1], [], []>} : vector<128x128xf32>, vector<128x64xf32>, vector<128x64xf32> -> vector<128x64xf32>
    %cst_7 = arith.constant dense<0.000000e+00> : vector<128x64xf32>
    %15 = tpu.matmul %11, %14, %cst_7 {dimension_numbers = #tpu.dot_dimension_numbers<[1], [0], [0], [1], [0, 0, 1, 1], [], []>} : vector<128x128xf32>, vector<128x64xf32>, vector<128x64xf32> -> vector<128x64xf32>
    %cst_8 = arith.constant 0.000000e+00 : f32
    %16 = vector.broadcast %cst_8 : f32 to vector<128x64xf32>
    %17 = arith.cmpf ogt, %15, %16 : vector<128x64xf32>
    %cst_9 = arith.constant 2.000000e-01 : f32
    %18 = vector.broadcast %cst_9 : f32 to vector<128x64xf32>
    %19 = arith.mulf %18, %15 : vector<128x64xf32>
    %20 = arith.select %17, %15, %19 : vector<128x64xi1>, vector<128x64xf32>
    %c0_10 = arith.constant 0 : index
    %c0_11 = arith.constant 0 : index
    %21 = vector.load %arg3[%c0_10, %c0_11] : memref<64x128xf32, #tpu.memory_space<vmem>>, vector<64x128xf32>
    %cst_12 = arith.constant dense<0.000000e+00> : vector<128x128xf32>
    %22 = tpu.matmul %20, %21, %cst_12 {dimension_numbers = #tpu.dot_dimension_numbers<[1], [0], [0], [1], [0, 0, 1, 1], [], []>} : vector<128x64xf32>, vector<64x128xf32>, vector<128x128xf32> -> vector<128x128xf32>
    %cst_13 = arith.constant dense<0.000000e+00> : vector<128x128xf32>
    %23 = tpu.matmul %11, %22, %cst_13 {dimension_numbers = #tpu.dot_dimension_numbers<[1], [0], [0], [1], [0, 0, 1, 1], [], []>} : vector<128x128xf32>, vector<128x128xf32>, vector<128x128xf32> -> vector<128x128xf32>
    %24 = tpu.transpose %23, [1, 0] : vector<128x128xf32> -> vector<128x128xf32>
    %c0_14 = arith.constant 0 : index
    %c0_15 = arith.constant 0 : index
    %25 = vector.load %arg4[%c0_14, %c0_15] : memref<128x128xf32, #tpu.memory_space<vmem>>, vector<128x128xf32>
    tpu.vector_store %arg4[%c0_14, %c0_15], %24 {strides = array<i32>} : memref<128x128xf32, #tpu.memory_space<vmem>>, vector<128x128xf32>,
    return
  }
}

module attributes {stable_mosaic.version = 11 : i64} {
  func.func @pool_classify_kernel(%arg0: i32, %arg1: memref<1x128x196xf32, #tpu.memory_space<vmem>>, %arg2: memref<128x128xf32, #tpu.memory_space<vmem>>, %arg3: memref<1x1x128xf32, #tpu.memory_space<vmem>>) attributes {dimension_semantics = [#tpu.dimension_semantics<parallel>], iteration_bounds = array<i64: 2>, scalar_prefetch = 0 : i64, scratch_operands = 0 : i64, tpu.core_type = #tpu.core_type<tc>, window_params = [{transform_indices = @transform_0, window_bounds = array<i64: 1, 128, 196>}, {pipeline_mode = #tpu.pipeline_mode<synchronous>, transform_indices = @transform_1, window_bounds = array<i64: 128, 128>}, {transform_indices = @transform_2, window_bounds = array<i64: 1, 1, 128>}]} {
    %c0 = arith.constant 0 : index
    %c0_0 = arith.constant 0 : index
    %c0_1 = arith.constant 0 : index
    %0 = vector.load %arg1[%c0, %c0_0, %c0_1] : memref<1x128x196xf32, #tpu.memory_space<vmem>>, vector<1x128x196xf32>
    %cst = arith.constant dense<0xFF800000> : vector<1x128xf32>
    %1 = vector.multi_reduction <maximumf>, %0, %cst [2] : vector<1x128x196xf32> to vector<1x128xf32>
    %c0_2 = arith.constant 0 : index
    %c0_3 = arith.constant 0 : index
    %2 = vector.load %arg2[%c0_2, %c0_3] : memref<128x128xf32, #tpu.memory_space<vmem>>, vector<128x128xf32>
    %cst_4 = arith.constant dense<0.000000e+00> : vector<1x128xf32>
    %3 = tpu.matmul %1, %2, %cst_4 {dimension_numbers = #tpu.dot_dimension_numbers<[1], [0], [0], [1], [0, 0, 1, 1], [], []>} : vector<1x128xf32>, vector<128x128xf32>, vector<1x128xf32> -> vector<1x128xf32>
    %c0_5 = arith.constant 0 : index
    %c0_6 = arith.constant 0 : index
    %c0_7 = arith.constant 0 : index
    %4 = vector.load %arg3[%c0_5, %c0_6, %c0_7] : memref<1x1x128xf32, #tpu.memory_space<vmem>>, vector<1x1x128xf32>
    %5 = vector.shape_cast %4 : vector<1x1x128xf32> to vector<1x128xf32>
    %6 = vector.shape_cast %3 : vector<1x128xf32> to vector<1x1x128xf32>
    tpu.vector_store %arg3[%c0_5, %c0_6, %c0_7], %6 {strides = array<i32>} : memref<1x1x128xf32, #tpu.memory_space<vmem>>, vector<1x1x128xf32>,
    return
  }
  func.func @transform_0(%arg0: i32) -> (i32, i32, i32) {
    %c0_i32 = arith.constant 0 : i32
    %c0_i32_0 = arith.constant 0 : i32
    %c0_i32_1 = arith.constant 0 : i32
    return %arg0, %c0_i32, %c0_i32_0 : i32, i32, i32
  }
  func.func @transform_1(%arg0: i32) -> (i32, i32) {
    %c0_i32 = arith.constant 0 : i32
    %c0_i32_0 = arith.constant 0 : i32
    %c0_i32_1 = arith.constant 0 : i32
    return %c0_i32, %c0_i32_0 : i32, i32
  }
  func.func @transform_2(%arg0: i32) -> (i32, i32, i32) {
    %c0_i32 = arith.constant 0 : i32
    %c0_i32_0 = arith.constant 0 : i32
    %c0_i32_1 = arith.constant 0 : i32
    return %arg0, %c0_i32, %c0_i32_0 : i32, i32, i32
  }
}

</mosaic_0001>

<bundles_post_ra>
// kernel: gcn_resnet_forward.3
= control target key start
LH: loop header
LB: loop body
LE: loop exit
PB: predicated region body
PF: predicated region fallthrough
CT: control target
= control target key end

     0   :  { %7 = vsyncpa [#allocation3], 0  ;;  %s751_s0 = inlined_call_operand.vmem [shape: f32[2,128,196], index: 0, kind: input, shape index: {}]   ;;  %s752_s1 = inlined_call_operand.vmem [shape: f32[128,128], index: 1, kind: input, shape index: {}]   ;;  %s753_s2 = inlined_call_operand.hbm [shape: f32[2,1,128], index: 2, kind: output, shape index: {}]  }
   0x1   :  { %9 = vsyncpa [#allocation3 + $0x1], 0  ;;  %s550_s9 = smov 0   ;;  %s552_s10 = smov 0  }
   0x2   :  { %s554_s11 = smov 0   ;;  %s556_s12 = smov 0  }
   0x3 LB: > { %s571_s13 = sadd.s32 4294967295, %s533_s12   ;;  %s423_s14 = sadd.s32 4294967294, %s533_s12   ;;  %s533_s12 = sphi %s556_s12, %s759_s12   ;;  %s529_s11 = sphi %s554_s11, %s758_s11   ;;  %s525_s10 = sphi %s552_s10, %s757_s10   ;;  %s521_s9 = sphi %s550_s9, %s756_s9  }
   0x4   : > { %s575_s15 = sadd.s32 1, %s533_s12   ;;  %s69_s16 = sadd.s32 1, %s529_s11 }
   0x5   : > { %s66_s17 = ssub.s32 %s533_s12, %s575_s15  ;;  %p79_p0 = scmp.ne.s32.totalorder %s529_s11, %s525_s10 }
   0x6   : > { %p67_p1 = scmp.eq.s32.totalorder %s66_s17, 0  ;;  %p80_p2 = scmp.eq.s32.totalorder %s571_s13, 1 }
   0x7   : > { %p85_p3 = scmp.ne.s32.totalorder %s525_s10, %s521_s9  ;;  %p86_p4 = scmp.eq.s32.totalorder %s423_s14, 1 }
   0x8   : > { %s586_s18 = scalar_select %p67_p1, %s529_s11, %s69_s16  }
   0x9   : > { %p588_p5 = por %p80_p2, %p79_p0  ;;  %p592_p6 = por %p86_p4, %p85_p3 }
   0xa   : > { %p426_p7 = scmp.ge.s32.totalorder %s533_s12, 1  ;;  %p115_p8 = scmp.lt.s32.totalorder %s533_s12, 3 }
   0xc   : > { %p116_p9 = pnand %p426_p7, %p115_p8 }
   0xd   : > { %p136_p10 = scmp.lt.s32.totalorder (!%p116_p9), %s571_s13, 1  ;;  %s134_s17 = sand.u32 (!%p116_p9), 1, %s525_s10  }
   0xe   : > { %119 = sbr.rel (%p116_p9) target bundleno = 315 (0x13b), region = 28  ;;  %s364_s23 = scalar_lea.hbm (!%p116_p9), %s753_s2, %s571_s13 }
   0xf   : > { %s135_s24 = scalar_lea.vmem (!%p116_p9), [#allocation2], %s134_s17  ;;  %s368_s26 = sshll.u32 (!%p116_p9), %s364_s23, 4  ;;  %s369_s26 = int_to_ptr.hbm [resolvable:$true] %s368_s26 }
  0x10   : > { %s356_s27 = scalar_lea.sflag (!%p116_p9), [#allocation3], %s134_s17  ;;  %s485_s28 = sshra.s32 (!%p116_p9), %s369_s26, 4  ;;  %s486_s28 = int_to_ptr.hbm [resolvable:$true] %s485_s28 }
  0x11   : > { %s487_s29 = scalar_lea.hbm (!%p116_p9), %s486_s28, 1  ;;  %s491_s4 = scalar_lea.hbm (!%p116_p9), %s753_s2, 2 }
  0x12   : > { %p488_p11 = scmp.ne.s32.totalorder (!%p116_p9), %s486_s28, %s487_s29  ;;  %p492_p0 = scmp.lt.s32.totalorder (!%p116_p9), %s486_s28, %s753_s2 }
  0x13   : > { %s137_s21 = scalar_select %p136_p10, %s571_s13, 1  ;;  %vm173_vm0 = vcmask 556032   ;;  %vm275_vm1 = vcmask 130112   ;;  %vm279_vm2 = vcmask 195712   ;;  %vm283_vm3 = vcmask 261312  }
  0x14   : > { %vm287_vm4 = vcmask 326912   ;;  %vm291_vm5 = vcmask 392512   ;;  %vm295_vm6 = vcmask 458112   ;;  %vm299_vm7 = vcmask 523712   ;;  %p489_p12 = pnand %p488_p11, %p588_p5  ;;  %p493_p1 = scmp.lt.s32.totalorder %s491_s4, %s487_s29 }
  0x15   : > { %s431_s22 = sshll.u32 %s137_s21, 8  ;;  %vm303_vm8 = vcmask 589312   ;;  %vm307_vm9 = vcmask 654912   ;;  %vm311_vm10 = vcmask 720512   ;;  %vm315_vm11 = vcmask 786112  }
  0x16   : > { %s603_s25 = scalar_lea.vmem %s751_s0, %s431_s22  ;;  %vm319_vm12 = vcmask 851712   ;;  %vm323_vm13 = vcmask 917312   ;;  %vm327_vm14 = vcmask 982912   ;;  %vm331_vm15 = vcmask 1048512   ;;  %p490_p13 = pneg %p489_p12 }
  0x17   : > { %v141_v0 = vld [vmem:[%s603_s25] sm:$0xff]  ;;  %v142_v1 = vld [vmem:[%s603_s25 + $0x8] sm:$0xff]  ;;  %v144_v10 = vld [vmem:[%s603_s25 + $0x18] sm:$0xff]  ;;  %p494_p2 = por %p493_p1, %p492_p0 }
  0x18   : > { %v145_v2 = vld [vmem:[%s603_s25 + $0x20] sm:$0xff]  ;;  %v174_v3 = vsel %vm173_vm0, %v142_v1, -inf  ;;  %v146_v4 = vld [vmem:[%s603_s25 + $0x28] sm:$0xff]  ;;  %v148_v13 = vld [vmem:[%s603_s25 + $0x38] sm:$0xff]  ;;  %v178_v16 = vsel %vm173_vm0, %v144_v10, -inf  ;;  %v270_v10 = vlaneseq }
  0x19   : > { %v149_v5 = vld [vmem:[%s603_s25 + $0x40] sm:$0xff]  ;;  %v150_v6 = vld [vmem:[%s603_s25 + $0x48] sm:$0xff]  ;;  %v175_v7 = vmax.f32 %v141_v0, %v174_v3  ;;  %v182_v8 = vsel %vm173_vm0, %v146_v4, -inf  ;;  %v152_v14 = vld [vmem:[%s603_s25 + $0x58] sm:$0xff]  ;;  %v186_v18 = vsel %vm173_vm0, %v148_v13, -inf  ;;  %p495_p3 = pnand %p494_p2, %p490_p13 }
  0x1a   : > { %v190_v9 = vsel %vm173_vm0, %v150_v6, -inf  ;;  %v183_v11 = vmax.f32 %v145_v2, %v182_v8  ;;  %v143_v15 = vld [vmem:[%s603_s25 + $0x10] sm:$0xff]  ;;  %v194_v20 = vsel %vm173_vm0, %v152_v14, -inf  ;;  %v154_v24 = vld [vmem:[%s603_s25 + $0x68] sm:$0xff]  ;;  %v156_v25 = vld [vmem:[%s603_s25 + $0x78] sm:$0xff] }
  0x1b   : > { %v191_v12 = vmax.f32 %v149_v5, %v190_v9  ;;  %176 = vmax.xlane.f32.xlu0 %v175_v7  ;;  %v147_v17 = vld [vmem:[%s603_s25 + $0x30] sm:$0xff]  ;;  %v179_v21 = vmax.f32 %v143_v15, %v178_v16  ;;  %v158_v26 = vld [vmem:[%s603_s25 + $0x88] sm:$0xff]  ;;  %v153_v27 = vld [vmem:[%s603_s25 + $0x60] sm:$0xff]  ;;  %v198_v28 = vsel %vm173_vm0, %v154_v24, -inf  ;;  %v202_v30 = vsel %vm173_vm0, %v156_v25, -inf }
  0x1c   : > { %184 = vmax.xlane.f32.xlu1 %v183_v11  ;;  %v151_v19 = vld [vmem:[%s603_s25 + $0x50] sm:$0xff]  ;;  %v187_v22 = vmax.f32 %v147_v17, %v186_v18  ;;  %v157_v31 = vld [vmem:[%s603_s25 + $0x80] sm:$0xff]  ;;  %v206_v32 = vsel %vm173_vm0, %v158_v26, -inf  ;;  %v199_v33 = vmax.f32 %v153_v27, %v198_v28  ;;  %v160_v36 = vld [vmem:[%s603_s25 + $0x98] sm:$0xff]  ;;  %v689_v16 = vand.u32 127, %v270_v10 }
  0x1d   : > { %192 = vmax.xlane.f32.xlu2 %v191_v12  ;;  %v195_v23 = vmax.f32 %v151_v19, %v194_v20  ;;  %v155_v29 = vld [vmem:[%s603_s25 + $0x70] sm:$0xff]  ;;  %v207_v35 = vmax.f32 %v157_v31, %v206_v32  ;;  %v162_v37 = vld [vmem:[%s603_s25 + $0xa8] sm:$0xff]  ;;  %v164_v38 = vld [vmem:[%s603_s25 + $0xb8] sm:$0xff]  ;;  %v210_v40 = vsel %vm173_vm0, %v160_v36, -inf }
  0x1e   : > { %v203_v34 = vmax.f32 %v155_v29, %v202_v30  ;;  %v159_v39 = vld [vmem:[%s603_s25 + $0x90] sm:$0xff]  ;;  %v161_v41 = vld [vmem:[%s603_s25 + $0xa0] sm:$0xff]  ;;  %v214_v42 = vsel %vm173_vm0, %v162_v37, -inf  ;;  %v218_v44 = vsel %vm173_vm0, %v164_v38, -inf  ;;  %v166_v48 = vld [vmem:[%s603_s25 + $0xc8] sm:$0xff]  ;;  %v273_v19 = vadd.s32 4294967288, %v689_v16 }
  0x1f   : > { %v163_v43 = vld [vmem:[%s603_s25 + $0xb0] sm:$0xff]  ;;  %v211_v45 = vmax.f32 %v159_v39, %v210_v40  ;;  %v215_v46 = vmax.f32 %v161_v41, %v214_v42  ;;  %v168_v49 = vld [vmem:[%s603_s25 + $0xd8] sm:$0xff]  ;;  %v170_v50 = vld [vmem:[%s603_s25 + $0xe8] sm:$0xff]  ;;  %v222_v52 = vsel %vm173_vm0, %v166_v48, -inf  ;;  %v277_v20 = vadd.s32 4294967280, %v689_v16 }
  0x20   : > { %v219_v47 = vmax.f32 %v163_v43, %v218_v44  ;;  %v165_v51 = vld [vmem:[%s603_s25 + $0xc0] sm:$0xff]  ;;  %v167_v53 = vld [vmem:[%s603_s25 + $0xd0] sm:$0xff]  ;;  %v226_v54 = vsel %vm173_vm0, %v168_v49, -inf  ;;  %v230_v56 = vsel %vm173_vm0, %v170_v50, -inf  ;;  %v172_v60 = vld [vmem:[%s603_s25 + $0xf8] sm:$0xff]  ;;  %v285_v32 = vadd.s32 4294967264, %v689_v16 }
  0x21   : > { %v169_v55 = vld [vmem:[%s603_s25 + $0xe0] sm:$0xff]  ;;  %v223_v57 = vmax.f32 %v165_v51, %v222_v52  ;;  %v227_v58 = vmax.f32 %v167_v53, %v226_v54  ;;  %v171_v61 = vld [vmem:[%s603_s25 + $0xf0] sm:$0xff]  ;;  %v234_v62 = vsel %vm173_vm0, %v172_v60, -inf  ;;  %v253_v0 = vld [vmem:[%s752_s1 + $0x78] sm:$0xff]  ;;  %v297_v40 = vadd.s32 4294967240, %v689_v16  ;;  %s366_s25 = sshll.u32 %s135_s24, 4  ;;  %s367_s25 = int_to_ptr.vmem [resolvable:$true] %s366_s25 }
  0x22   : > { %v231_v59 = vmax.f32 %v169_v55, %v230_v56  ;;  %v235_v63 = vmax.f32 %v171_v61, %v234_v62  ;;  %334 = vmatpush.msra.mxu0 %v253_v0  ;;  %v252_v1 = vld [vmem:[%s752_s1 + $0x70] sm:$0xff]  ;;  %v251_v2 = vld [vmem:[%s752_s1 + $0x68] sm:$0xff]  ;;  %v250_v3 = vld [vmem:[%s752_s1 + $0x60] sm:$0xff]  ;;  %v305_v48 = vadd.s32 4294967224, %v689_v16  ;;  %v309_v52 = vadd.s32 4294967216, %v689_v16 }
  0x23   : > { %180 = vmax.xlane.f32.xlu0 %v179_v21  ;;  %v249_v4 = vld [vmem:[%s752_s1 + $0x58] sm:$0xff]  ;;  %v248_v5 = vld [vmem:[%s752_s1 + $0x50] sm:$0xff]  ;;  %v247_v6 = vld [vmem:[%s752_s1 + $0x48] sm:$0xff]  ;;  %v281_v21 = vadd.s32 4294967272, %v689_v16  ;;  %v317_v61 = vadd.s32 4294967200, %v689_v16 }
  0x24   : > { %188 = vmax.xlane.f32.xlu1 %v187_v22  ;;  %335 = vmatpush.msra.mxu0 %v252_v1  ;;  %v246_v7 = vld [vmem:[%s752_s1 + $0x40] sm:$0xff]  ;;  %v245_v8 = vld [vmem:[%s752_s1 + $0x38] sm:$0xff]  ;;  %v244_v9 = vld [vmem:[%s752_s1 + $0x30] sm:$0xff] }
  0x25   : > { %196 = vmax.xlane.f32.xlu2 %v195_v23  ;;  %v243_v12 = vld [vmem:[%s752_s1 + $0x28] sm:$0xff]  ;;  %v242_v15 = vld [vmem:[%s752_s1 + $0x20] sm:$0xff]  ;;  %v241_v17 = vld [vmem:[%s752_s1 + $0x18] sm:$0xff] }
  0x26   : > { %336 = vmatpush.msra.mxu0 %v251_v2  ;;  %v240_v18 = vld [vmem:[%s752_s1 + $0x10] sm:$0xff]  ;;  %v239_v23 = vld [vmem:[%s752_s1 + $0x8] sm:$0xff]  ;;  %v238_v28 = vld [vmem:[%s752_s1] sm:$0xff] }
  0x28   : > { %337 = vmatpush.msra.mxu0 %v250_v3 }
  0x2a   : > { %338 = vmatpush.msra.mxu0 %v249_v4  ;;  %v325_v4 = vadd.s32 4294967184, %v689_v16 }
  0x2b   : > { %200 = vmax.xlane.f32.xlu0 %v199_v33 }
  0x2c   : > { %204 = vmax.xlane.f32.xlu1 %v203_v34  ;;  %339 = vmatpush.msra.mxu0 %v248_v5  ;;  %v289_v34 = vadd.s32 4294967256, %v689_v16 }
  0x2d   : > { %208 = vmax.xlane.f32.xlu2 %v207_v35  ;;  %v293_v35 = vadd.s32 4294967248, %v689_v16 }
  0x2e   : > { %340 = vmatpush.msra.mxu0 %v247_v6 }
  0x30   : > { %341 = vmatpush.msra.mxu0 %v246_v7 }
  0x32   : > { %342 = vmatpush.msra.mxu0 %v245_v8 }
  0x33   : > { %212 = vmax.xlane.f32.xlu0 %v211_v45  ;;  %v301_v45 = vadd.s32 4294967232, %v689_v16 }
  0x34   : > { %216 = vmax.xlane.f32.xlu1 %v215_v46  ;;  %343 = vmatpush.msra.mxu0 %v244_v9  ;;  %v329_v9 = vadd.s32 4294967176, %v689_v16 }
  0x35   : > { %220 = vmax.xlane.f32.xlu2 %v219_v47 }
  0x36   : > { %344 = vmatpush.msra.mxu0 %v243_v12 }
  0x38   : > { %345 = vmatpush.msra.mxu0 %v242_v15 }
  0x3a   : > { %346 = vmatpush.msra.mxu0 %v241_v17 }
  0x3b   : > { %224 = vmax.xlane.f32.xlu0 %v223_v57  ;;  %v313_v57 = vadd.s32 4294967208, %v689_v16 }
  0x3c   : > { %228 = vmax.xlane.f32.xlu1 %v227_v58  ;;  %347 = vmatpush.msra.mxu0 %v240_v18 }
  0x3d   : > { %232 = vmax.xlane.f32.xlu2 %v231_v59 }
  0x3e   : > { %348 = vmatpush.msra.mxu0 %v239_v23 }
  0x40   : > { %349 = vmatpush.msra.mxu0 %v238_v28 }
  0x43   : > { %236 = vmax.xlane.f32.xlu0 %v235_v63  ;;  %v321_v63 = vadd.s32 4294967192, %v689_v16 }
  0x8e   : > { %v177_v11 = vpop.xlane.xlu0 %176 }
  0x8f   : > { %v185_v13 = vpop.xlane.xlu1 %184  ;;  %v272_v24 = vperm.slane %v177_v11, %v689_v16 }
  0x90   : > { %v193_v14 = vpop.xlane.xlu2 %192  ;;  %v278_v29 = vperm.slane %v185_v13, %v277_v20 }
  0x91   : > { %v286_v37 = vperm.slane %v193_v14, %v285_v32 }
  0x96   : > { %v181_v22 = vpop.xlane.xlu0 %180 }
  0x97   : > { %v274_v25 = vperm.slane %v181_v22, %v273_v19  ;;  %v189_v26 = vpop.xlane.xlu1 %188 }
  0x98   : > { %v197_v27 = vpop.xlane.xlu2 %196  ;;  %v282_v31 = vperm.slane %v189_v26, %v281_v21 }
  0x99   : > { %v276_v30 = vsel %vm275_vm1, %v274_v25, %v272_v24  ;;  %v290_v39 = vperm.slane %v197_v27, %v289_v34 }
  0x9a   : > { %v280_v33 = vsel %vm279_vm2, %v278_v29, %v276_v30 }
  0x9b   : > { %v284_v36 = vsel %vm283_vm3, %v282_v31, %v280_v33 }
  0x9c   : > { %v288_v43 = vsel %vm287_vm4, %v286_v37, %v284_v36 }
  0x9d   : > { %v292_v46 = vsel %vm291_vm5, %v290_v39, %v288_v43 }
  0x9e   : > { %v201_v38 = vpop.xlane.xlu0 %200 }
  0x9f   : > { %v205_v41 = vpop.xlane.xlu1 %204  ;;  %v294_v44 = vperm.slane %v201_v38, %v293_v35 }
  0xa0   : > { %v209_v42 = vpop.xlane.xlu2 %208  ;;  %v298_v47 = vperm.slane %v205_v41, %v297_v40 }
  0xa1   : > { %v296_v49 = vsel %vm295_vm6, %v294_v44, %v292_v46  ;;  %v302_v50 = vperm.slane %v209_v42, %v301_v45 }
  0xa2   : > { %v300_v53 = vsel %vm299_vm7, %v298_v47, %v296_v49 }
  0xa3   : > { %v304_v58 = vsel %vm303_vm8, %v302_v50, %v300_v53 }
  0xa6   : > { %v213_v51 = vpop.xlane.xlu0 %212 }
  0xa7   : > { %v306_v54 = vperm.slane %v213_v51, %v305_v48  ;;  %v217_v55 = vpop.xlane.xlu1 %216 }
  0xa8   : > { %v221_v56 = vpop.xlane.xlu2 %220  ;;  %v310_v59 = vperm.slane %v217_v55, %v309_v52 }
  0xa9   : > { %v308_v60 = vsel %vm307_vm9, %v306_v54, %v304_v58  ;;  %v314_v62 = vperm.slane %v221_v56, %v313_v57 }
  0xaa   : > { %v312_v0 = vsel %vm311_vm10, %v310_v59, %v308_v60 }
  0xab   : > { %v316_v5 = vsel %vm315_vm11, %v314_v62, %v312_v0 }
  0xae   : > { %v225_v1 = vpop.xlane.xlu0 %224 }
  0xaf   : > { %v318_v2 = vperm.slane %v225_v1, %v317_v61  ;;  %v229_v3 = vpop.xlane.xlu1 %228 }
  0xb0   : > { %v322_v6 = vperm.slane %v229_v3, %v321_v63  ;;  %v233_v7 = vpop.xlane.xlu2 %232 }
  0xb1   : > { %v320_v8 = vsel %vm319_vm12, %v318_v2, %v316_v5  ;;  %v326_v10 = vperm.slane %v233_v7, %v325_v4 }
  0xb2   : > { %v324_v11 = vsel %vm323_vm13, %v322_v6, %v320_v8 }
  0xb3   : > { %v328_v14 = vsel %vm327_vm14, %v326_v10, %v324_v11 }
  0xb6   : > { %v237_v12 = vpop.xlane.xlu0 %236 }
  0xb7   : > { %v330_v13 = vperm.slane %v237_v12, %v329_v9 }
  0xb9   : > { %v332_v15 = vsel %vm331_vm15, %v330_v13, %v328_v14 }
  0xba   : > { %350 = vmatmul.f32.vlgmr.msra.gmra.mxu0 %v332_v15 }
 0x137   : > { %v351_v16 = vpop.f32.mrf.mxu0 }
 0x138   : > { %354 = vst [vmem:[%s135_s24] sm:$0x1] %v351_v16 }
 0x139   : > { %498 = shalt.err (!%p495_p3)
}
 0x13a   : > { %432 = dma.vmem_to_hbm [thread:$0]  (%p588_p5), %s367_s25, 16, %s369_s26, %s356_s27  }
 0x13b PF: > { %p438_p4 = scmp.ge.s32.totalorder %s533_s12, 2  ;;  %s380_s6 = sand.u32 1, %s521_s9  }
 0x13c   : > { %s381_s7 = scalar_lea.sflag [#allocation3], %s380_s6 }
 0x13d   : > { %p435_p7 = pnand %p438_p4, %p592_p6 }
 0x13f   : > { %p436_p8 = pneg %p435_p7 }
 0x141   : > { %516 = dma.done.wait (%p436_p8), %s381_s7, 16  }
 0x142   : > { %518 = vsyncadd (%p436_p8), %s381_s7, 4294967280  ;;  %p12_p9 = scmp.ge.s32.totalorder %s575_s15, 4   ;;  %s756_s9 = smov %s525_s10 }
 0x143   : > { %s757_s10 = smov %s529_s11  ;;  %s758_s11 = smov %s586_s18 }
 0x144   : > { %s759_s12 = smov %s575_s15  ;;  %14 = sbr.rel (!%p12_p9) target bundleno = 3 (0x3), region = 63 }
 0x149   :  { %386 = vsyncpa [#allocation3], 1 }
 0x14a   :  { %388 = vsyncpa [#allocation3 + $0x1], 1 }

// kernel: gcn_resnet_forward.2
= control target key start
LH: loop header
LB: loop body
LE: loop exit
PB: predicated region body
PF: predicated region fallthrough
CT: control target
= control target key end

     0   :  { %9 = vsyncpa [#allocation3], 0  ;;  %s940_s18 = smov [#allocation2]   ;;  %s941_s20 = smov 128   ;;  %s1669_s0 = inlined_call_operand.vmem [shape: f32[128,128], index: 0, kind: input, shape index: {}]   ;;  %s1670_s1 = inlined_call_operand.vmem [shape: f32[128,128], index: 1, kind: input, shape index: {}]   ;;  %s1671_s2 = inlined_call_operand.vmem [shape: f32[128,64], index: 2, kind: input, shape index: {}]   ;;  %s1672_s3 = inlined_call_operand.hbm [shape: f32[64,128], index: 3, kind: input, shape index: {}]   ;;  %s1673_s4 = inlined_call_operand.vmem [shape: f32[128,128], index: 4, kind: output, shape index: {}]  }
   0x1   :  { %s20_s17 = sshll.u32 %s1672_s3, 4  ;;  %s22_s19 = sshll.u32 %s940_s18, 4  ;;  %s21_s17 = int_to_ptr.hbm [resolvable:$true] %s20_s17  ;;  %s23_s19 = int_to_ptr.vmem [resolvable:$true] %s22_s19 }
   0x2   :  { %s942_s21 = smov 8  }
   0x3   :  { %28 = dma.hbm_to_vmem [thread:$0]  %s21_s17, 1024, %s23_s19, [#allocation3], %s941_s20, %s941_s20, %s942_s21  }
   0x4   :  { %938 = dma.done.wait [#allocation3], 1024  }
   0x5   :  { %939 = vsyncadd [#allocation3], 4294966272  ;;  %v444_v0 = vld [vmem:[%s1671_s2 + $0x78] sm:$0xff]  ;;  %v977_v1 = vld [vmem:[%s1670_s1 + $0x10] sm:$0xff]  ;;  %vm326_vm11 = vcmask 130112  }
   0x6   :  { %v443_v2 = vld [vmem:[%s1671_s2 + $0x70] sm:$0xff]  ;;  %445 = vmatpush.msra.mxu0 %v444_v0  ;;  %53 = vadd.xlane.f32.xlu1 %v977_v1  ;;  %v986_v3 = vld [vmem:[%s1670_s1] sm:$0xff]  ;;  %v442_v4 = vld [vmem:[%s1671_s2 + $0x68] sm:$0xff] }
   0x7   :  { %49 = vadd.xlane.f32.xlu0 %v986_v3  ;;  %v995_v5 = vld [vmem:[%s1670_s1 + $0x20] sm:$0xff]  ;;  %v440_v7 = vld [vmem:[%s1671_s2 + $0x58] sm:$0xff]  ;;  %v1012_v9 = vld [vmem:[%s1670_s1 + $0x8] sm:$0xff] }
   0x8   :  { %446 = vmatpush.msra.mxu0 %v443_v2  ;;  %v441_v6 = vld [vmem:[%s1671_s2 + $0x60] sm:$0xff]  ;;  %57 = vadd.xlane.f32.xlu2 %v995_v5  ;;  %v1007_v8 = vld [vmem:[%s1670_s1 + $0x18] sm:$0xff]  ;;  %v439_v10 = vld [vmem:[%s1671_s2 + $0x50] sm:$0xff] }
   0x9   :  { %v1021_v11 = vld [vmem:[%s1670_s1 + $0x28] sm:$0xff]  ;;  %v437_v13 = vld [vmem:[%s1671_s2 + $0x40] sm:$0xff]  ;;  %v436_v14 = vld [vmem:[%s1671_s2 + $0x38] sm:$0xff] }
   0xa   :  { %447 = vmatpush.msra.mxu0 %v442_v4  ;;  %v438_v12 = vld [vmem:[%s1671_s2 + $0x48] sm:$0xff]  ;;  %v1037_v15 = vld [vmem:[%s1670_s1 + $0x38] sm:$0xff]  ;;  %v1042_v16 = vld [vmem:[%s1670_s1 + $0x30] sm:$0xff] }
   0xb   :  { %v435_v17 = vld [vmem:[%s1671_s2 + $0x30] sm:$0xff]  ;;  %v1051_v18 = vld [vmem:[%s1670_s1 + $0x40] sm:$0xff]  ;;  %v434_v19 = vld [vmem:[%s1671_s2 + $0x28] sm:$0xff] }
   0xc   :  { %448 = vmatpush.msra.mxu0 %v441_v6  ;;  %v433_v20 = vld [vmem:[%s1671_s2 + $0x20] sm:$0xff]  ;;  %v432_v21 = vld [vmem:[%s1671_s2 + $0x18] sm:$0xff]  ;;  %v1067_v22 = vld [vmem:[%s1670_s1 + $0x50] sm:$0xff] }
   0xd   :  { %v42_v23 = vld [vmem:[%s1670_s1 + $0x48] sm:$0xff]  ;;  %v431_v24 = vld [vmem:[%s1671_s2 + $0x10] sm:$0xff]  ;;  %v44_v25 = vld [vmem:[%s1670_s1 + $0x58] sm:$0xff] }
   0xe   :  { %449 = vmatpush.msra.mxu0 %v440_v7  ;;  %55 = vadd.xlane.f32.xlu1 %v1007_v8  ;;  %v430_v26 = vld [vmem:[%s1671_s2 + $0x8] sm:$0xff]  ;;  %v429_v27 = vld [vmem:[%s1671_s2] sm:$0xff]  ;;  %v47_v31 = vld [vmem:[%s1670_s1 + $0x70] sm:$0xff] }
   0xf   :  { %51 = vadd.xlane.f32.xlu0 %v1012_v9  ;;  %v413_v28 = vld [vmem:[%s1669_s0] sm:$0xff]  ;;  %v46_v29 = vld [vmem:[%s1670_s1 + $0x68] sm:$0xff]  ;;  %v48_v33 = vld [vmem:[%s1670_s1 + $0x78] sm:$0xff] }
  0x10   :  { %450 = vmatpush.msra.mxu0 %v439_v10  ;;  %59 = vadd.xlane.f32.xlu2 %v1021_v11  ;;  %v45_v30 = vld [vmem:[%s1670_s1 + $0x60] sm:$0xff]  ;;  %v414_v32 = vld [vmem:[%s1669_s0 + $0x8] sm:$0xff]  ;;  %v415_v34 = vld [vmem:[%s1669_s0 + $0x10] sm:$0xff] }
  0x11   :  { %v416_v35 = vld [vmem:[%s1669_s0 + $0x18] sm:$0xff]  ;;  %v417_v36 = vld [vmem:[%s1669_s0 + $0x20] sm:$0xff]  ;;  %v418_v37 = vld [vmem:[%s1669_s0 + $0x28] sm:$0xff] }
  0x12   :  { %451 = vmatpush.msra.mxu0 %v438_v12  ;;  %v419_v38 = vld [vmem:[%s1669_s0 + $0x30] sm:$0xff]  ;;  %v420_v39 = vld [vmem:[%s1669_s0 + $0x38] sm:$0xff]  ;;  %v421_v40 = vld [vmem:[%s1669_s0 + $0x40] sm:$0xff] }
  0x13   :  { %v422_v41 = vld [vmem:[%s1669_s0 + $0x48] sm:$0xff]  ;;  %v423_v42 = vld [vmem:[%s1669_s0 + $0x50] sm:$0xff]  ;;  %v424_v43 = vld [vmem:[%s1669_s0 + $0x58] sm:$0xff] }
  0x14   :  { %452 = vmatpush.msra.mxu0 %v437_v13  ;;  %v425_v44 = vld [vmem:[%s1669_s0 + $0x60] sm:$0xff]  ;;  %v426_v45 = vld [vmem:[%s1669_s0 + $0x68] sm:$0xff]  ;;  %v427_v46 = vld [vmem:[%s1669_s0 + $0x70] sm:$0xff] }
  0x15   :  { %v428_v47 = vld [vmem:[%s1669_s0 + $0x78] sm:$0xff] }
  0x16   :  { %453 = vmatpush.msra.mxu0 %v436_v14  ;;  %63 = vadd.xlane.f32.xlu1 %v1037_v15 }
  0x17   :  { %61 = vadd.xlane.f32.xlu0 %v1042_v16 }
  0x18   :  { %454 = vmatpush.msra.mxu0 %v435_v17  ;;  %65 = vadd.xlane.f32.xlu2 %v1051_v18 }
  0x1a   :  { %455 = vmatpush.msra.mxu0 %v434_v19 }
  0x1c   :  { %456 = vmatpush.msra.mxu0 %v433_v20 }
  0x1e   :  { %457 = vmatpush.msra.mxu0 %v432_v21  ;;  %69 = vadd.xlane.f32.xlu1 %v1067_v22 }
  0x1f   :  { %67 = vadd.xlane.f32.xlu0 %v42_v23 }
  0x20   :  { %458 = vmatpush.msra.mxu0 %v431_v24  ;;  %71 = vadd.xlane.f32.xlu2 %v44_v25 }
  0x22   :  { %459 = vmatpush.msra.mxu0 %v430_v26 }
  0x24   :  { %460 = vmatpush.msra.mxu0 %v429_v27 }
  0x25   :  { %461 = vmatmul.f32.vlgmr.msra.gmra.mxu0 %v413_v28 }
  0x26   :  { %75 = vadd.xlane.f32.xlu1 %v46_v29 }
  0x27   :  { %73 = vadd.xlane.f32.xlu0 %v45_v30 }
  0x28   :  { %77 = vadd.xlane.f32.xlu2 %v47_v31 }
  0x2d   :  { %464 = vmatmul.f32.gmra.mxu0 %v414_v32 }
  0x2f   :  { %79 = vadd.xlane.f32.xlu0 %v48_v33 }
  0x35   :  { %467 = vmatmul.f32.gmra.mxu0 %v415_v34 }
  0x3d   :  { %470 = vmatmul.f32.gmra.mxu0 %v416_v35 }
  0x45   :  { %473 = vmatmul.f32.gmra.mxu0 %v417_v36 }
  0x4d   :  { %476 = vmatmul.f32.gmra.mxu0 %v418_v37 }
  0x55   :  { %479 = vmatmul.f32.gmra.mxu0 %v419_v38 }
  0x5d   :  { %482 = vmatmul.f32.gmra.mxu0 %v420_v39 }
  0x60   :  { %257 = vxpose.xlu1.b32.start [1/16] %v986_v3, 128 }
  0x65   :  { %485 = vmatmul.f32.gmra.mxu0 %v421_v40 }
  0x68   :  { %258 = vxpose.xlu1.b32.cont [2/16] %v1012_v9, 128 }
  0x6d   :  { %488 = vmatmul.f32.gmra.mxu0 %v422_v41 }
  0x70   :  { %259 = vxpose.xlu1.b32.cont [3/16] %v977_v1, 128 }
  0x75   :  { %491 = vmatmul.f32.gmra.mxu0 %v423_v42 }
  0x78   :  { %260 = vxpose.xlu1.b32.cont [4/16] %v1007_v8, 128 }
  0x79   :  { %v54_v56 = vpop.xlane.xlu1 %53 }
  0x7a   :  { %v50_v55 = vpop.xlane.xlu0 %49  ;;  %v1178_v0 = vmax.f32 %v54_v56, 1e-12 }
  0x7b   :  { %v58_v58 = vpop.xlane.xlu2 %57  ;;  %v1171_v59 = vmax.f32 %v50_v55, 1e-12 }
  0x7c   :  { %v1190_v6 = vmax.f32 %v58_v58, 1e-12  ;;  %vm123_vm6 = vweird.f32 %v1178_v0 }
  0x7d   :  { %494 = vmatmul.f32.gmra.mxu0 %v424_v43  ;;  %882 = vrsqrt.f32 %v1171_v59  ;;  %vm103_vm0 = vweird.f32 %v1171_v59 }
  0x7e   :  { %vm143_vm13 = vweird.f32 %v1190_v6 }
  0x80   :  { %261 = vxpose.xlu1.b32.cont [5/16] %v995_v5, 128 }
  0x81   :  { %v56_v63 = vpop.xlane.xlu1 %55 }
  0x82   :  { %v52_v60 = vpop.xlane.xlu0 %51  ;;  %v1186_v4 = vmax.f32 %v56_v63, 1e-12 }
  0x83   :  { %v1173_v61 = vmax.f32 %v52_v60, 1e-12  ;;  %v60_v1 = vpop.xlane.xlu2 %59  ;;  %v1184_v3 = vpop.eup %882 }
  0x84   :  { %v98_v8 = vmul.f32 %v1184_v3, %v1171_v59  ;;  %v1201_v13 = vmax.f32 %v60_v1, 1e-12  ;;  %vm104_vm1 = vweird.f32 %v1184_v3  ;;  %vm133_vm9 = vweird.f32 %v1186_v4 }
  0x85   :  { %497 = vmatmul.f32.gmra.mxu0 %v425_v44  ;;  %884 = vrsqrt.f32 %v1173_v61  ;;  %vm113_vm2 = vweird.f32 %v1173_v61  ;;  %vm105_vm4 = vmor %vm103_vm0, %vm104_vm1  ;;  %vm330_vm0 = vcmask 195712  }
  0x86   :  { %886 = vrsqrt.f32 %v1178_v0  ;;  %v99_v14 = vmul.f32 %v1184_v3, %v98_v8 }
  0x87   :  { %888 = vrsqrt.f32 %v1186_v4 }
  0x88   :  { %262 = vxpose.xlu1.b32.cont [6/16] %v1021_v11, 128  ;;  %890 = vrsqrt.f32 %v1190_v6  ;;  %v100_v21 = vmul.f32 0.5, %v99_v14 }
  0x89   :  { %v64_v9 = vpop.xlane.xlu1 %63 }
  0x8a   :  { %v62_v7 = vpop.xlane.xlu0 %61  ;;  %v1197_v11 = vmax.f32 %v64_v9, 1e-12 }
  0x8b   :  { %v1188_v5 = vpop.eup %884  ;;  %v66_v19 = vpop.xlane.xlu2 %65 }
  0x8c   :  { %v108_v10 = vmul.f32 %v1188_v5, %v1173_v61  ;;  %v1199_v12 = vpop.eup %886  ;;  %892 = vrsqrt.f32 %v1197_v11  ;;  %vm114_vm3 = vweird.f32 %v1188_v5  ;;  %vm173_vm15 = vweird.f32 %v1197_v11 }
  0x8d   :  { %500 = vmatmul.f32.gmra.mxu0 %v426_v45  ;;  %v118_v17 = vmul.f32 %v1199_v12, %v1178_v0  ;;  %894 = vrsqrt.f32 %v1201_v13  ;;  %v1214_v20 = vpop.eup %888  ;;  %vm115_vm5 = vmor %vm113_vm2, %vm114_vm3  ;;  %vm124_vm7 = vweird.f32 %v1199_v12  ;;  %vm153_vm2 = vweird.f32 %v1201_v13 }
  0x8e   :  { %v128_v27 = vmul.f32 %v1214_v20, %v1186_v4  ;;  %vm125_vm8 = vmor %vm123_vm6, %vm124_vm7  ;;  %vm134_vm10 = vweird.f32 %v1214_v20  ;;  %vm334_vm7 = vcmask 261312  }
  0x8f   :  { %vm1299_vm12 = vmor %vm133_vm9, %vm134_vm10  ;;  %vm338_vm10 = vcmask 326912  }
  0x90   :  { %263 = vxpose.xlu1.b32.cont [7/16] %v1042_v16, 128  ;;  %v129_v37 = vmul.f32 %v1214_v20, %v128_v27 }
  0x91   :  { %v70_v39 = vpop.xlane.xlu1 %69 }
  0x92   :  { %v68_v26 = vpop.xlane.xlu0 %67  ;;  %v130_v55 = vmul.f32 0.5, %v129_v37  ;;  %v1254_v58 = vmax.f32 %v70_v39, 1e-12 }
  0x93   :  { %v1242_v41 = vmax.f32 %v68_v26, 1e-12  ;;  %v72_v44 = vpop.xlane.xlu2 %71 }
  0x95   :  { %503 = vmatmul.f32.gmra.mxu0 %v427_v46 }
  0x98   :  { %264 = vxpose.xlu1.b32.cont [8/16] %v1037_v15, 128  ;;  %v1205_v15 = vmax.f32 %v62_v7, 1e-12  ;;  %v1260_v7 = vmax.f32 %v72_v44, 1e-12 }
  0x99   :  { %v76_v26 = vpop.xlane.xlu1 %75 }
  0x9a   :  { %896 = vrsqrt.f32 %v1205_v15  ;;  %v74_v61 = vpop.xlane.xlu0 %73  ;;  %v1294_v39 = vmax.f32 %v76_v26, 1e-12 }
  0x9d   :  { %506 = vmatmul.f32.gmra.mxu0 %v428_v47 }
  0xa0   :  { %265 = vxpose.xlu1.b32.cont [9/16] %v1051_v18, 128  ;;  %v109_v18 = vmul.f32 %v1188_v5, %v108_v10 }
  0xa2   :  { %v1154_v48 = vpop.f32.mrf.mxu0  ;;  %v110_v24 = vmul.f32 0.5, %v109_v18 }
  0xa4   :  { %v111_v35 = vsub.f32 1.5, %v110_v24 }
  0xa6   :  { %v112_v47 = vmul.f32 %v1188_v5, %v111_v35  ;;  %v78_v35 = vpop.xlane.xlu2 %77 }
  0xa8   :  { %266 = vxpose.xlu1.b32.cont [10/16] %v42_v23, 128  ;;  %v119_v23 = vmul.f32 %v1199_v12, %v118_v17  ;;  %v1270_v17 = vsel %vm115_vm5, %v1188_v5, %v112_v47  ;;  %v1282_v5 = vmax.f32 %v74_v61, 1e-12  ;;  %v1314_v47 = vmax.f32 %v78_v35, 1e-12 }
  0xa9   :  { %vm163_vm5 = vweird.f32 %v1205_v15 }
  0xaa   :  { %v1156_v49 = vpop.f32.mrf.mxu0  ;;  %v120_v34 = vmul.f32 0.5, %v119_v23 }
  0xac   :  { %v121_v63 = vsub.f32 1.5, %v120_v34 }
  0xae   :  { %v122_v24 = vmul.f32 %v1199_v12, %v121_v63 }
  0xb0   :  { %267 = vxpose.xlu1.b32.cont [11/16] %v1067_v22, 128  ;;  %v1217_v22 = vpop.eup %890  ;;  %v1297_v4 = vsel %vm125_vm8, %v1199_v12, %v122_v24 }
  0xb1   :  { %v1224_v28 = vpop.eup %892  ;;  %vm144_vm14 = vweird.f32 %v1217_v22 }
  0xb2   :  { %v1159_v50 = vpop.f32.mrf.mxu0  ;;  %v168_v38 = vmul.f32 %v1224_v28, %v1197_v11  ;;  %vm145_vm1 = vmor %vm143_vm13, %vm144_vm14  ;;  %vm174_vm8 = vweird.f32 %v1224_v28  ;;  %vm342_vm14 = vcmask 392512  }
  0xb4   :  { %v169_v56 = vmul.f32 %v1224_v28, %v168_v38 }
  0xb6   :  { %v1274_v18 = vmul.f32 0.5, %v169_v56 }
  0xb8   :  { %268 = vxpose.xlu1.b32.cont [12/16] %v44_v25, 128  ;;  %v1220_v25 = vmax.f32 %v66_v19, 1e-12 }
  0xba   :  { %v1161_v51 = vpop.f32.mrf.mxu0  ;;  %898 = vrsqrt.f32 %v1220_v25 }
  0xbb   :  { %900 = vrsqrt.f32 %v1242_v41 }
  0xbc   :  { %902 = vrsqrt.f32 %v1254_v58 }
  0xbd   :  { %904 = vrsqrt.f32 %v1260_v7 }
  0xbe   :  { %906 = vrsqrt.f32 %v1282_v5 }
  0xbf   :  { %908 = vrsqrt.f32 %v1294_v39 }
  0xc0   :  { %269 = vxpose.xlu1.b32.cont [13/16] %v45_v30, 128  ;;  %v138_v30 = vmul.f32 %v1217_v22, %v1190_v6  ;;  %910 = vrsqrt.f32 %v1314_v47 }
  0xc2   :  { %v1163_v52 = vpop.f32.mrf.mxu0  ;;  %v139_v42 = vmul.f32 %v1217_v22, %v138_v30 }
  0xc4   :  { %v140_v1 = vmul.f32 0.5, %v139_v42 }
  0xc8   :  { %270 = vxpose.xlu1.b32.cont [14/16] %v46_v29, 128  ;;  %v1226_v29 = vpop.eup %894 }
  0xc9   :  { %v1233_v36 = vpop.eup %896  ;;  %v148_v40 = vmul.f32 %v1226_v29, %v1201_v13  ;;  %vm154_vm3 = vweird.f32 %v1226_v29 }
  0xca   :  { %v1165_v53 = vpop.f32.mrf.mxu0  ;;  %v158_v46 = vmul.f32 %v1233_v36, %v1205_v15  ;;  %v1256_v59 = vpop.eup %898  ;;  %vm164_vm6 = vweird.f32 %v1233_v36 }
  0xcb   :  { %v149_v60 = vmul.f32 %v1226_v29, %v148_v40  ;;  %v178_v19 = vmul.f32 %v1256_v59, %v1220_v25  ;;  %v1287_v27 = vpop.eup %900  ;;  %vm165_vm9 = vmor %vm163_vm5, %vm164_vm6  ;;  %vm184_vm13 = vweird.f32 %v1256_v59  ;;  %vm350_vm6 = vcmask 523712  }
  0xcc   :  { %v159_v14 = vmul.f32 %v1233_v36, %v158_v46  ;;  %v1305_v42 = vpop.eup %902  ;;  %v188_v44 = vmul.f32 %v1287_v27, %v1242_v41 }
  0xcd   :  { %v179_v34 = vmul.f32 %v1256_v59, %v178_v19  ;;  %vm204_vm5 = vweird.f32 %v1305_v42 }
  0xce   :  { %v160_v30 = vmul.f32 0.5, %v159_v14  ;;  %v198_v14 = vmul.f32 %v1305_v42, %v1254_v58 }
  0xd0   :  { %271 = vxpose.xlu1.b32.cont [15/16] %v47_v31, 128  ;;  %v321_v31 = vlaneseq }
  0xd2   :  { %v1167_v54 = vpop.f32.mrf.mxu0  ;;  %v1247_v43 = vand.u32 127, %v321_v31  ;;  %v141_v31 = vsub.f32 1.5, %v140_v1  ;;  %v1330_v1 = vpop.eup %904 }
  0xd3   :  { %v1350_v24 = vpop.eup %906  ;;  %v208_v26 = vmul.f32 %v1330_v1, %v1260_v7 }
  0xd4   :  { %v324_v10 = vadd.s32 4294967288, %v1247_v43  ;;  %v328_v37 = vadd.s32 4294967280, %v1247_v43  ;;  %v332_v56 = vadd.s32 4294967272, %v1247_v43  ;;  %v336_v6 = vadd.s32 4294967264, %v1247_v43 }
  0xd5   :  { %v344_v15 = vadd.s32 4294967248, %v1247_v43 }
  0xd6   :  { %v325_v0 = vperm.slane %v1270_v17, %v324_v10  ;;  %v329_v61 = vperm.slane %v1297_v4, %v328_v37  ;;  %v180_v10 = vmul.f32 0.5, %v179_v34 }
  0xd8   :  { %272 = vxpose.xlu1.b32.end [16/16] %v48_v33, 128  ;;  %v101_v33 = vsub.f32 1.5, %v100_v21  ;;  %v150_v21 = vmul.f32 0.5, %v149_v60  ;;  %v142_v60 = vmul.f32 %v1217_v22, %v141_v31  ;;  %v181_v34 = vsub.f32 1.5, %v180_v10 }
  0xda   :  { %v1169_v57 = vpop.f32.mrf.mxu0  ;;  %v102_v45 = vmul.f32 %v1184_v3, %v101_v33  ;;  %v171_v33 = vsub.f32 1.5, %v1274_v18  ;;  %v151_v46 = vsub.f32 1.5, %v150_v21  ;;  %v161_v18 = vsub.f32 1.5, %v160_v30 }
  0xdb   :  { %v1342_v21 = vsel %vm145_vm1, %v1217_v22, %v142_v60  ;;  %v199_v22 = vmul.f32 %v1305_v42, %v198_v14  ;;  %v340_v30 = vadd.s32 4294967256, %v1247_v43  ;;  %v182_v11 = vmul.f32 %v1256_v59, %v181_v34 }
  0xdc   :  { %v1265_v9 = vsel %vm105_vm4, %v1184_v3, %v102_v45  ;;  %v131_v3 = vsub.f32 1.5, %v130_v55  ;;  %v80_v55 = vpop.xlane.xlu0 %79  ;;  %vm1344_vm4 = vmor %vm153_vm2, %vm154_vm3  ;;  %v162_v31 = vmul.f32 %v1233_v36, %v161_v18  ;;  %vm194_vm1 = vweird.f32 %v1287_v27 }
  0xdd   :  { %v323_v23 = vperm.slane %v1265_v9, %v1247_v43  ;;  %v1336_v19 = vmax.f32 %v80_v55, 1e-12  ;;  %v200_v60 = vmul.f32 0.5, %v199_v22  ;;  %vm346_vm2 = vcmask 458112  }
  0xde   :  { %v132_v38 = vmul.f32 %v1214_v20, %v131_v3  ;;  %v152_v3 = vmul.f32 %v1226_v29, %v151_v46  ;;  %v1388_v10 = vsel %vm165_vm9, %v1233_v36, %v162_v31  ;;  %v352_v31 = vadd.s32 4294967232, %v1247_v43 }
  0xdf   :  { %v327_v12 = vsel %vm326_vm11, %v325_v0, %v323_v23  ;;  %912 = vrsqrt.f32 %v1336_v19  ;;  %vm183_vm11 = vweird.f32 %v1220_v25  ;;  %v345_v23 = vperm.slane %v1388_v10, %v344_v15 }
  0xe0   :  { %v1322_v63 = vsel %vm1299_vm12, %v1214_v20, %v132_v38  ;;  %v189_v20 = vmul.f32 %v1287_v27, %v188_v44  ;;  %v331_v0 = vsel %vm330_vm0, %v329_v61, %v327_v12  ;;  %v337_v38 = vperm.slane %v1342_v21, %v336_v6  ;;  %v1370_v44 = vpop.eup %908  ;;  %vm175_vm12 = vmor %vm173_vm15, %vm174_vm8 }
  0xe1   :  { %v333_v13 = vperm.slane %v1322_v63, %v332_v56  ;;  %v1364_v40 = vsel %vm1344_vm4, %v1226_v29, %v152_v3  ;;  %v218_v12 = vmul.f32 %v1350_v24, %v1282_v5  ;;  %v172_v56 = vmul.f32 %v1224_v28, %v171_v33  ;;  %v1390_v33 = vpop.eup %910  ;;  %vm185_vm0 = vmor %vm183_vm11, %vm184_vm13 }
  0xe2   :  { %v1175_v62 = vpop.f32.mrf.mxu0  ;;  %v190_v35 = vmul.f32 0.5, %v189_v20  ;;  %v209_v29 = vmul.f32 %v1330_v1, %v208_v26  ;;  %v341_v61 = vperm.slane %v1364_v40, %v340_v30  ;;  %v228_v18 = vmul.f32 %v1370_v44, %v1294_v39 }
  0xe3   :  { %v335_v55 = vsel %vm334_vm7, %v333_v13, %v331_v0  ;;  %v348_v6 = vadd.s32 4294967240, %v1247_v43  ;;  %vm193_vm15 = vweird.f32 %v1242_v41  ;;  %v219_v3 = vmul.f32 %v1350_v24, %v218_v12 }
  0xe4   :  { %v191_v14 = vsub.f32 1.5, %v190_v35  ;;  %v339_v20 = vsel %vm338_vm10, %v337_v38, %v335_v55  ;;  %v1399_v13 = vsel %vm175_vm12, %v1224_v28, %v172_v56  ;;  %v210_v36 = vmul.f32 0.5, %v209_v29  ;;  %vm195_vm4 = vmor %vm193_vm15, %vm194_vm1 }
  0xe5   :  { %v1405_v26 = vpop.eup %912  ;;  %v201_v0 = vsub.f32 1.5, %v200_v60  ;;  %v238_v22 = vmul.f32 %v1390_v33, %v1314_v47  ;;  %v343_v30 = vsel %vm342_vm14, %v341_v61, %v339_v20  ;;  %vm203_vm3 = vweird.f32 %v1254_v58 }
  0xe6   :  { %v192_v28 = vmul.f32 %v1287_v27, %v191_v14  ;;  %v229_v25 = vmul.f32 %v1370_v44, %v228_v18  ;;  %v349_v35 = vperm.slane %v1399_v13, %v348_v6  ;;  %v1415_v38 = vsel %vm185_vm0, %v1256_v59, %v182_v11  ;;  %vm205_vm8 = vmor %vm203_vm3, %vm204_vm5 }
  0xe7   :  { %v220_v12 = vmul.f32 0.5, %v219_v3  ;;  %v211_v55 = vsub.f32 1.5, %v210_v36  ;;  %v248_v56 = vmul.f32 %v1405_v26, %v1336_v19  ;;  %v347_v29 = vsel %vm346_vm2, %v345_v23, %v343_v30 }
  0xe8   :  { %v356_v15 = vadd.s32 4294967224, %v1247_v43  ;;  %v202_v59 = vmul.f32 %v1305_v42, %v201_v0  ;;  %vm213_vm7 = vweird.f32 %v1260_v7  ;;  %v239_v60 = vmul.f32 %v1390_v33, %v238_v22 }
  0xe9   :  { %v353_v61 = vperm.slane %v1415_v38, %v352_v31  ;;  %v1432_v14 = vsel %vm195_vm4, %v1287_v27, %v192_v28  ;;  %vm214_vm9 = vweird.f32 %v1330_v1  ;;  %v230_v18 = vmul.f32 0.5, %v229_v25 }
  0xea   :  { %v1182_v2 = vpop.f32.mrf.mxu0  ;;  %v221_v20 = vsub.f32 1.5, %v220_v12  ;;  %vm354_vm10 = vcmask 589312   ;;  %v351_v6 = vsel %vm350_vm6, %v349_v35, %v347_v29  ;;  %v212_v11 = vmul.f32 %v1330_v1, %v211_v55  ;;  %vm215_vm12 = vmor %vm213_vm7, %vm214_vm9 }
  0xeb   :  { %vm223_vm11 = vweird.f32 %v1282_v5  ;;  %v249_v27 = vmul.f32 %v1405_v26, %v248_v56  ;;  %v357_v58 = vperm.slane %v1432_v14, %v356_v15  ;;  %v1447_v3 = vsel %vm205_vm8, %v1305_v42, %v202_v59 }
  0xec   :  { %vm224_vm13 = vweird.f32 %v1350_v24  ;;  %v231_v36 = vsub.f32 1.5, %v230_v18  ;;  %vm358_vm14 = vcmask 654912   ;;  %v355_v23 = vsel %vm354_vm10, %v353_v61, %v351_v6 }
  0xed   :  { %v364_v0 = vadd.s32 4294967208, %v1247_v43  ;;  %v222_v22 = vmul.f32 %v1350_v24, %v221_v20  ;;  %vm233_vm15 = vweird.f32 %v1294_v39  ;;  %v1459_v7 = vsel %vm215_vm12, %v1330_v1, %v212_v11  ;;  %vm225_vm0 = vmor %vm223_vm11, %vm224_vm13 }
  0xee   :  { %vm234_vm1 = vweird.f32 %v1370_v44  ;;  %vm362_vm2 = vcmask 720512   ;;  %v359_v31 = vsel %vm358_vm14, %v357_v58, %v355_v23  ;;  %v368_v28 = vadd.s32 4294967200, %v1247_v43 }
  0xef   :  { %v365_v25 = vperm.slane %v1459_v7, %v364_v0  ;;  %v1469_v1 = vsel %vm225_vm0, %v1350_v24, %v222_v22  ;;  %vm235_vm3 = vmor %vm233_vm15, %vm234_vm1  ;;  %vm243_vm4 = vweird.f32 %v1314_v47  ;;  %vm244_vm5 = vweird.f32 %v1390_v33  ;;  %v629_v22 = vld [vmem:[#allocation2 + $0x30] sm:$0xff] }
  0xf0   :  { %vm366_vm6 = vcmask 786112   ;;  %v372_v35 = vadd.s32 4294967192, %v1247_v43  ;;  %v369_v24 = vperm.slane %v1469_v1, %v368_v28  ;;  %vm245_vm7 = vmor %vm243_vm4, %vm244_vm5  ;;  %vm253_vm8 = vweird.f32 %v1336_v19 }
  0xf1   :  { %vm254_vm9 = vweird.f32 %v1405_v26  ;;  %vm370_vm10 = vcmask 851712   ;;  %v376_v47 = vadd.s32 4294967184, %v1247_v43  ;;  %vm374_vm12 = vcmask 917312  }
  0xf2   :  { %v1207_v16 = vpop.f32.mrf.mxu0  ;;  %vm255_vm11 = vmor %vm253_vm8, %vm254_vm9  ;;  %vm378_vm13 = vcmask 982912   ;;  %vm382_vm14 = vcmask 1048512   ;;  %vm631_vm0 = vcmask 523264  }
  0xfa   :  { %v1230_v32 = vpop.f32.mrf.mxu0 }
 0x102   :  { %v1262_v8 = vpop.f32.mrf.mxu0 }
 0x104   :  { %v1375_v46 = vpop.trf.xlu1 }
 0x10a   :  { %v1311_v45 = vpop.f32.mrf.mxu0 }
 0x10c   :  { %v1428_v41 = vpop.trf.xlu1 }
 0x112   :  { %v504_v37 = vpop.f32.mrf.mxu0 }
 0x114   :  { %v275_v5 = vpop.trf.xlu1 }
 0x11a   :  { %v507_v34 = vpop.f32.mrf.mxu0 }
 0x11b   :  { %510 = vmatpush.msra.mxu1 %v507_v34 }
 0x11c   :  { %v276_v15 = vpop.trf.xlu1 }
 0x11d   :  { %511 = vmatpush.msra.mxu1 %v504_v37  ;;  %v360_v37 = vadd.s32 4294967216, %v1247_v43 }
 0x11f   :  { %512 = vmatpush.msra.mxu1 %v1311_v45  ;;  %v240_v45 = vmul.f32 0.5, %v239_v60  ;;  %v361_v42 = vperm.slane %v1447_v3, %v360_v37 }
 0x121   :  { %513 = vmatpush.msra.mxu1 %v1262_v8  ;;  %v250_v8 = vmul.f32 0.5, %v249_v27  ;;  %v241_v30 = vsub.f32 1.5, %v240_v45  ;;  %v363_v34 = vsel %vm362_vm2, %v361_v42, %v359_v31  ;;  %v626_v31 = vld [vmem:[#allocation2 + $0x18] sm:$0xff] }
 0x123   :  { %514 = vmatpush.msra.mxu1 %v1230_v32  ;;  %v232_v32 = vmul.f32 %v1370_v44, %v231_v36  ;;  %v242_v12 = vmul.f32 %v1390_v33, %v241_v30 }
 0x125   :  { %515 = vmatpush.msra.mxu1 %v1207_v16  ;;  %v251_v16 = vsub.f32 1.5, %v250_v8  ;;  %v1481_v39 = vsel %vm235_vm3, %v1370_v44, %v232_v32  ;;  %v1490_v56 = vsel %vm245_vm7, %v1390_v33, %v242_v12  ;;  %v380_v44 = vadd.s32 4294967176, %v1247_v43  ;;  %v625_v32 = vld [vmem:[#allocation2 + $0x10] sm:$0xff] }
 0x127   :  { %516 = vmatpush.msra.mxu1 %v1182_v2  ;;  %v367_v2 = vsel %vm366_vm6, %v365_v25, %v363_v34  ;;  %v252_v55 = vmul.f32 %v1405_v26, %v251_v16  ;;  %v623_v16 = vld [vmem:[#allocation2] sm:$0xff] }
 0x128   :  { %v371_v19 = vsel %vm370_vm10, %v369_v24, %v367_v2 }
 0x129   :  { %517 = vmatpush.msra.mxu1 %v1175_v62  ;;  %v373_v62 = vperm.slane %v1481_v39, %v372_v35  ;;  %v1497_v29 = vsel %vm255_vm11, %v1405_v26, %v252_v55 }
 0x12a   :  { %v381_v59 = vperm.slane %v1497_v29, %v380_v44 }
 0x12b   :  { %518 = vmatpush.msra.mxu1 %v1169_v57  ;;  %v377_v57 = vperm.slane %v1490_v56, %v376_v47  ;;  %v375_v33 = vsel %vm374_vm12, %v373_v62, %v371_v19 }
 0x12d   :  { %519 = vmatpush.msra.mxu1 %v1167_v54  ;;  %v289_v54 = vmul.f32 %v1375_v46, %v1265_v9  ;;  %v379_v43 = vsel %vm378_vm13, %v377_v57, %v375_v33 }
 0x12f   :  { %520 = vmatpush.msra.mxu1 %v1165_v53  ;;  %v1505_v53 = vsel %vm382_vm14, %v381_v59, %v379_v43 }
 0x130   :  { %v1509_v26 = vmul.f32 %v1505_v53, %v289_v54 }
 0x131   :  { %521 = vmatpush.msra.mxu1 %v1163_v52  ;;  %v277_v52 = vpop.trf.xlu1 }
 0x133   :  { %522 = vmatpush.msra.mxu1 %v1161_v51  ;;  %v290_v51 = vmul.f32 %v1428_v41, %v1270_v17  ;;  %v293_v17 = vmul.f32 %v277_v52, %v1342_v21 }
 0x135   :  { %523 = vmatpush.msra.mxu1 %v1159_v50  ;;  %v1516_v9 = vmul.f32 %v1505_v53, %v290_v51  ;;  %v291_v50 = vmul.f32 %v275_v5, %v1297_v4  ;;  %v1531_v41 = vmul.f32 %v1505_v53, %v293_v17 }
 0x137   :  { %524 = vmatpush.msra.mxu1 %v1156_v49  ;;  %v1521_v49 = vmul.f32 %v1505_v53, %v291_v50 }
 0x139   :  { %525 = vmatpush.msra.mxu1 %v1154_v48  ;;  %v278_v46 = vpop.trf.xlu1  ;;  %v292_v48 = vmul.f32 %v276_v15, %v1322_v63 }
 0x13a   :  { %526 = vmatmul.f32.vlgmr.msra.gmra.mxu1 %v1509_v26  ;;  %v294_v18 = vmul.f32 %v278_v46, %v1364_v40 }
 0x13b   :  { %v1526_v61 = vmul.f32 %v1505_v53, %v292_v48 }
 0x13c   :  { %v1536_v20 = vmul.f32 %v1505_v53, %v294_v18 }
 0x141   :  { %v279_v60 = vpop.trf.xlu1 }
 0x142   :  { %529 = vmatmul.f32.gmra.mxu1 %v1516_v9  ;;  %v295_v6 = vmul.f32 %v279_v60, %v1388_v10 }
 0x144   :  { %v1541_v37 = vmul.f32 %v1505_v53, %v295_v6 }
 0x149   :  { %v280_v4 = vpop.trf.xlu1 }
 0x14a   :  { %532 = vmatmul.f32.gmra.mxu1 %v1521_v49  ;;  %v296_v21 = vmul.f32 %v280_v4, %v1399_v13 }
 0x14c   :  { %v1546_v27 = vmul.f32 %v1505_v53, %v296_v21 }
 0x151   :  { %v281_v63 = vpop.trf.xlu1 }
 0x152   :  { %535 = vmatmul.f32.gmra.mxu1 %v1526_v61  ;;  %v297_v40 = vmul.f32 %v281_v63, %v1415_v38  ;;  %v630_v38 = vld [vmem:[#allocation2 + $0x38] sm:$0xff] }
 0x153   :  { %688 = vmatpush.msra.mxu2 %v630_v38 }
 0x154   :  { %v1551_v45 = vmul.f32 %v1505_v53, %v297_v40 }
 0x155   :  { %689 = vmatpush.msra.mxu2 %v629_v22 }
 0x159   :  { %v282_v11 = vpop.trf.xlu1 }
 0x15a   :  { %538 = vmatmul.f32.gmra.mxu1 %v1531_v41  ;;  %v298_v10 = vmul.f32 %v282_v11, %v1432_v14  ;;  %v628_v14 = vld [vmem:[#allocation2 + $0x28] sm:$0xff] }
 0x15b   :  { %690 = vmatpush.msra.mxu2 %v628_v14 }
 0x15c   :  { %v1556_v36 = vmul.f32 %v1505_v53, %v298_v10 }
 0x161   :  { %v283_v58 = vpop.trf.xlu1 }
 0x162   :  { %541 = vmatmul.f32.gmra.mxu1 %v1536_v20  ;;  %v299_v23 = vmul.f32 %v283_v58, %v1447_v3  ;;  %v627_v3 = vld [vmem:[#allocation2 + $0x20] sm:$0xff] }
 0x163   :  { %691 = vmatpush.msra.mxu2 %v627_v3 }
 0x164   :  { %v1561_v0 = vmul.f32 %v1505_v53, %v299_v23 }
 0x165   :  { %692 = vmatpush.msra.mxu2 %v626_v31 }
 0x167   :  { %693 = vmatpush.msra.mxu2 %v625_v32 }
 0x169   :  { %v284_v13 = vpop.trf.xlu1 }
 0x16a   :  { %544 = vmatmul.f32.gmra.mxu1 %v1541_v37  ;;  %v300_v8 = vmul.f32 %v284_v13, %v1459_v7  ;;  %v624_v7 = vld [vmem:[#allocation2 + $0x8] sm:$0xff] }
 0x16b   :  { %694 = vmatpush.msra.mxu2 %v624_v7 }
 0x16c   :  { %v1566_v30 = vmul.f32 %v1505_v53, %v300_v8 }
 0x16d   :  { %695 = vmatpush.msra.mxu2 %v623_v16 }
 0x171   :  { %v285_v42 = vpop.trf.xlu1 }
 0x172   :  { %547 = vmatmul.f32.gmra.mxu1 %v1546_v27  ;;  %v301_v28 = vmul.f32 %v285_v42, %v1469_v1 }
 0x174   :  { %v1571_v5 = vmul.f32 %v1505_v53, %v301_v28 }
 0x179   :  { %v286_v25 = vpop.trf.xlu1 }
 0x17a   :  { %550 = vmatmul.f32.gmra.mxu1 %v1551_v45  ;;  %v302_v34 = vmul.f32 %v286_v25, %v1481_v39 }
 0x17c   :  { %v1576_v12 = vmul.f32 %v1505_v53, %v302_v34 }
 0x181   :  { %v287_v35 = vpop.trf.xlu1 }
 0x182   :  { %553 = vmatmul.f32.gmra.mxu1 %v1556_v36  ;;  %v303_v1 = vmul.f32 %v287_v35, %v1490_v56 }
 0x184   :  { %v1581_v24 = vmul.f32 %v1505_v53, %v303_v1 }
 0x189   :  { %v288_v2 = vpop.trf.xlu1 }
 0x18a   :  { %556 = vmatmul.f32.gmra.mxu1 %v1561_v0  ;;  %v304_v47 = vmul.f32 %v288_v2, %v1497_v29 }
 0x18c   :  { %v1586_v55 = vmul.f32 %v1505_v53, %v304_v47 }
 0x192   :  { %559 = vmatmul.f32.gmra.mxu1 %v1566_v30 }
 0x19a   :  { %562 = vmatmul.f32.gmra.mxu1 %v1571_v5 }
 0x1a2   :  { %565 = vmatmul.f32.gmra.mxu1 %v1576_v12 }
 0x1aa   :  { %568 = vmatmul.f32.gmra.mxu1 %v1581_v24 }
 0x1b2   :  { %571 = vmatmul.f32.gmra.mxu1 %v1586_v55 }
 0x1b7   :  { %v527_v39 = vpop.f32.mrf.mxu1 }
 0x1b8   :  { %vm575_vm15 = vcmp.gt.f32.partialorder %v527_v39, 0.0  ;;  %v591_v62 = vmul.f32 0.2, %v527_v39 }
 0x1ba   :  { %v607_v19 = vsel %vm575_vm15, %v527_v39, %v591_v62 }
 0x1bb   :  { %863 = vmatmul.msk.f32.vlgmr.msra.gmra.mxu2 %vm631_vm0, %v607_v19 }
 0x1bf   :  { %v530_v56 = vpop.f32.mrf.mxu1 }
 0x1c0   :  { %vm576_vm1 = vcmp.gt.f32.partialorder %v530_v56, 0.0  ;;  %v592_v44 = vmul.f32 0.2, %v530_v56 }
 0x1c2   :  { %v608_v57 = vsel %vm576_vm1, %v530_v56, %v592_v44 }
 0x1c3   :  { %864 = vmatmul.msk.f32.gmra.mxu2 %vm631_vm0, %v608_v57 }
 0x1c7   :  { %v533_v15 = vpop.f32.mrf.mxu1 }
 0x1c8   :  { %vm577_vm2 = vcmp.gt.f32.partialorder %v533_v15, 0.0  ;;  %v593_v29 = vmul.f32 0.2, %v533_v15 }
 0x1ca   :  { %v609_v33 = vsel %vm577_vm2, %v533_v15, %v593_v29 }
 0x1cb   :  { %865 = vmatmul.msk.f32.gmra.mxu2 %vm631_vm0, %v609_v33 }
 0x1cf   :  { %v536_v59 = vpop.f32.mrf.mxu1 }
 0x1d0   :  { %vm578_vm3 = vcmp.gt.f32.partialorder %v536_v59, 0.0  ;;  %v594_v54 = vmul.f32 0.2, %v536_v59 }
 0x1d2   :  { %v610_v43 = vsel %vm578_vm3, %v536_v59, %v594_v54 }
 0x1d3   :  { %866 = vmatmul.msk.f32.gmra.mxu2 %vm631_vm0, %v610_v43 }
 0x1d7   :  { %v539_v53 = vpop.f32.mrf.mxu1 }
 0x1d8   :  { %vm579_vm4 = vcmp.gt.f32.partialorder %v539_v53, 0.0  ;;  %v595_v52 = vmul.f32 0.2, %v539_v53 }
 0x1da   :  { %v611_v51 = vsel %vm579_vm4, %v539_v53, %v595_v52 }
 0x1db   :  { %867 = vmatmul.msk.f32.gmra.mxu2 %vm631_vm0, %v611_v51 }
 0x1df   :  { %v542_v50 = vpop.f32.mrf.mxu1 }
 0x1e0   :  { %vm580_vm5 = vcmp.gt.f32.partialorder %v542_v50, 0.0  ;;  %v596_v46 = vmul.f32 0.2, %v542_v50 }
 0x1e2   :  { %v612_v48 = vsel %vm580_vm5, %v542_v50, %v596_v46 }
 0x1e3   :  { %868 = vmatmul.msk.f32.gmra.mxu2 %vm631_vm0, %v612_v48 }
 0x1e7   :  { %v545_v60 = vpop.f32.mrf.mxu1 }
 0x1e8   :  { %vm581_vm6 = vcmp.gt.f32.partialorder %v545_v60, 0.0  ;;  %v597_v17 = vmul.f32 0.2, %v545_v60 }
 0x1ea   :  { %v613_v4 = vsel %vm581_vm6, %v545_v60, %v597_v17 }
 0x1eb   :  { %869 = vmatmul.msk.f32.gmra.mxu2 %vm631_vm0, %v613_v4 }
 0x1ef   :  { %v548_v18 = vpop.f32.mrf.mxu1 }
 0x1f0   :  { %vm582_vm7 = vcmp.gt.f32.partialorder %v548_v18, 0.0  ;;  %v598_v63 = vmul.f32 0.2, %v548_v18 }
 0x1f2   :  { %v614_v6 = vsel %vm582_vm7, %v548_v18, %v598_v63 }
 0x1f3   :  { %870 = vmatmul.msk.f32.gmra.mxu2 %vm631_vm0, %v614_v6 }
 0x1f7   :  { %v551_v21 = vpop.f32.mrf.mxu1 }
 0x1f8   :  { %vm583_vm8 = vcmp.gt.f32.partialorder %v551_v21, 0.0  ;;  %v599_v11 = vmul.f32 0.2, %v551_v21 }
 0x1fa   :  { %v615_v40 = vsel %vm583_vm8, %v551_v21, %v599_v11 }
 0x1fb   :  { %871 = vmatmul.msk.f32.gmra.mxu2 %vm631_vm0, %v615_v40 }
 0x1ff   :  { %v554_v58 = vpop.f32.mrf.mxu1 }
 0x200   :  { %vm584_vm9 = vcmp.gt.f32.partialorder %v554_v58, 0.0  ;;  %v600_v10 = vmul.f32 0.2, %v554_v58 }
 0x202   :  { %v616_v13 = vsel %vm584_vm9, %v554_v58, %v600_v10 }
 0x203   :  { %872 = vmatmul.msk.f32.gmra.mxu2 %vm631_vm0, %v616_v13 }
 0x207   :  { %v557_v23 = vpop.f32.mrf.mxu1 }
 0x208   :  { %vm585_vm10 = vcmp.gt.f32.partialorder %v557_v23, 0.0  ;;  %v601_v38 = vmul.f32 0.2, %v557_v23 }
 0x20a   :  { %v617_v22 = vsel %vm585_vm10, %v557_v23, %v601_v38 }
 0x20b   :  { %873 = vmatmul.msk.f32.gmra.mxu2 %vm631_vm0, %v617_v22 }
 0x20f   :  { %v560_v42 = vpop.f32.mrf.mxu1 }
 0x210   :  { %vm586_vm11 = vcmp.gt.f32.partialorder %v560_v42, 0.0  ;;  %v602_v8 = vmul.f32 0.2, %v560_v42 }
 0x212   :  { %v618_v14 = vsel %vm586_vm11, %v560_v42, %v602_v8 }
 0x213   :  { %874 = vmatmul.msk.f32.gmra.mxu2 %vm631_vm0, %v618_v14 }
 0x217   :  { %v563_v3 = vpop.f32.mrf.mxu1 }
 0x218   :  { %vm587_vm12 = vcmp.gt.f32.partialorder %v563_v3, 0.0  ;;  %v603_v31 = vmul.f32 0.2, %v563_v3 }
 0x21a   :  { %v619_v28 = vsel %vm587_vm12, %v563_v3, %v603_v31 }
 0x21b   :  { %875 = vmatmul.msk.f32.gmra.mxu2 %vm631_vm0, %v619_v28 }
 0x21f   :  { %v566_v32 = vpop.f32.mrf.mxu1 }
 0x220   :  { %vm588_vm13 = vcmp.gt.f32.partialorder %v566_v32, 0.0  ;;  %v604_v25 = vmul.f32 0.2, %v566_v32 }
 0x222   :  { %v620_v7 = vsel %vm588_vm13, %v566_v32, %v604_v25 }
 0x223   :  { %876 = vmatmul.msk.f32.gmra.mxu2 %vm631_vm0, %v620_v7 }
 0x227   :  { %v569_v16 = vpop.f32.mrf.mxu1 }
 0x228   :  { %vm589_vm14 = vcmp.gt.f32.partialorder %v569_v16, 0.0  ;;  %v605_v34 = vmul.f32 0.2, %v569_v16 }
 0x22a   :  { %v621_v35 = vsel %vm589_vm14, %v569_v16, %v605_v34 }
 0x22b   :  { %877 = vmatmul.msk.f32.gmra.mxu2 %vm631_vm0, %v621_v35 }
 0x22f   :  { %v572_v1 = vpop.f32.mrf.mxu1 }
 0x230   :  { %vm590_vm15 = vcmp.gt.f32.partialorder %v572_v1, 0.0  ;;  %v606_v2 = vmul.f32 0.2, %v572_v1 }
 0x232   :  { %v622_v47 = vsel %vm590_vm15, %v572_v1, %v606_v2 }
 0x233   :  { %878 = vmatmul.msk.f32.gmra.mxu2 %vm631_vm0, %v622_v47 }
 0x23e   :  { %v697_v39 = vpop.f32.mrf.mxu2 }
 0x246   :  { %v700_v62 = vpop.f32.mrf.mxu2 }
 0x24e   :  { %v703_v19 = vpop.f32.mrf.mxu2 }
 0x256   :  { %v706_v56 = vpop.f32.mrf.mxu2 }
 0x25e   :  { %v709_v44 = vpop.f32.mrf.mxu2 }
 0x266   :  { %v712_v57 = vpop.f32.mrf.mxu2 }
 0x26e   :  { %v715_v15 = vpop.f32.mrf.mxu2 }
 0x276   :  { %v718_v29 = vpop.f32.mrf.mxu2 }
 0x27e   :  { %v721_v33 = vpop.f32.mrf.mxu2 }
 0x286   :  { %v724_v59 = vpop.f32.mrf.mxu2 }
 0x28e   :  { %v727_v54 = vpop.f32.mrf.mxu2 }
 0x296   :  { %v730_v43 = vpop.f32.mrf.mxu2 }
 0x29e   :  { %v733_v53 = vpop.f32.mrf.mxu2 }
 0x2a6   :  { %v736_v52 = vpop.f32.mrf.mxu2 }
 0x2ae   :  { %v739_v51 = vpop.f32.mrf.mxu2 }
 0x2b6   :  { %v742_v50 = vpop.f32.mrf.mxu2 }
 0x2b7   :  { %745 = vmatpush.msra.mxu3 %v742_v50 }
 0x2b9   :  { %746 = vmatpush.msra.mxu3 %v739_v51 }
 0x2bb   :  { %747 = vmatpush.msra.mxu3 %v736_v52 }
 0x2bd   :  { %748 = vmatpush.msra.mxu3 %v733_v53 }
 0x2bf   :  { %749 = vmatpush.msra.mxu3 %v730_v43 }
 0x2c1   :  { %750 = vmatpush.msra.mxu3 %v727_v54 }
 0x2c3   :  { %751 = vmatpush.msra.mxu3 %v724_v59 }
 0x2c5   :  { %752 = vmatpush.msra.mxu3 %v721_v33 }
 0x2c7   :  { %753 = vmatpush.msra.mxu3 %v718_v29 }
 0x2c9   :  { %754 = vmatpush.msra.mxu3 %v715_v15 }
 0x2cb   :  { %755 = vmatpush.msra.mxu3 %v712_v57 }
 0x2cd   :  { %756 = vmatpush.msra.mxu3 %v709_v44 }
 0x2cf   :  { %757 = vmatpush.msra.mxu3 %v706_v56 }
 0x2d1   :  { %758 = vmatpush.msra.mxu3 %v703_v19 }
 0x2d3   :  { %759 = vmatpush.msra.mxu3 %v700_v62 }
 0x2d5   :  { %760 = vmatpush.msra.mxu3 %v697_v39 }
 0x2d6   :  { %761 = vmatmul.f32.vlgmr.msra.gmra.mxu3 %v1509_v26 }
 0x2de   :  { %764 = vmatmul.f32.gmra.mxu3 %v1516_v9 }
 0x2e6   :  { %767 = vmatmul.f32.gmra.mxu3 %v1521_v49 }
 0x2ee   :  { %770 = vmatmul.f32.gmra.mxu3 %v1526_v61 }
 0x2f6   :  { %773 = vmatmul.f32.gmra.mxu3 %v1531_v41 }
 0x2fe   :  { %776 = vmatmul.f32.gmra.mxu3 %v1536_v20 }
 0x306   :  { %779 = vmatmul.f32.gmra.mxu3 %v1541_v37 }
 0x30e   :  { %782 = vmatmul.f32.gmra.mxu3 %v1546_v27 }
 0x316   :  { %785 = vmatmul.f32.gmra.mxu3 %v1551_v45 }
 0x31e   :  { %788 = vmatmul.f32.gmra.mxu3 %v1556_v36 }
 0x326   :  { %791 = vmatmul.f32.gmra.mxu3 %v1561_v0 }
 0x32e   :  { %794 = vmatmul.f32.gmra.mxu3 %v1566_v30 }
 0x336   :  { %797 = vmatmul.f32.gmra.mxu3 %v1571_v5 }
 0x33e   :  { %800 = vmatmul.f32.gmra.mxu3 %v1576_v12 }
 0x346   :  { %803 = vmatmul.f32.gmra.mxu3 %v1581_v24 }
 0x34e   :  { %806 = vmatmul.f32.gmra.mxu3 %v1586_v55 }
 0x359   :  { %v762_v26 = vpop.f32.mrf.mxu3 }
 0x35a   :  { %810 = vxpose.xlu2.b32.start [1/16] %v762_v26, 128 }
 0x361   :  { %v765_v9 = vpop.f32.mrf.mxu3 }
 0x362   :  { %811 = vxpose.xlu2.b32.cont [2/16] %v765_v9, 128 }
 0x369   :  { %v768_v49 = vpop.f32.mrf.mxu3 }
 0x36a   :  { %812 = vxpose.xlu2.b32.cont [3/16] %v768_v49, 128 }
 0x371   :  { %v771_v61 = vpop.f32.mrf.mxu3 }
 0x372   :  { %813 = vxpose.xlu2.b32.cont [4/16] %v771_v61, 128 }
 0x379   :  { %v774_v41 = vpop.f32.mrf.mxu3 }
 0x37a   :  { %814 = vxpose.xlu2.b32.cont [5/16] %v774_v41, 128 }
 0x381   :  { %v777_v20 = vpop.f32.mrf.mxu3 }
 0x382   :  { %815 = vxpose.xlu2.b32.cont [6/16] %v777_v20, 128 }
 0x389   :  { %v780_v37 = vpop.f32.mrf.mxu3 }
 0x38a   :  { %816 = vxpose.xlu2.b32.cont [7/16] %v780_v37, 128 }
 0x391   :  { %v783_v27 = vpop.f32.mrf.mxu3 }
 0x392   :  { %817 = vxpose.xlu2.b32.cont [8/16] %v783_v27, 128 }
 0x399   :  { %v786_v45 = vpop.f32.mrf.mxu3 }
 0x39a   :  { %818 = vxpose.xlu2.b32.cont [9/16] %v786_v45, 128 }
 0x3a1   :  { %v789_v36 = vpop.f32.mrf.mxu3 }
 0x3a2   :  { %819 = vxpose.xlu2.b32.cont [10/16] %v789_v36, 128 }
 0x3a9   :  { %v792_v0 = vpop.f32.mrf.mxu3 }
 0x3aa   :  { %820 = vxpose.xlu2.b32.cont [11/16] %v792_v0, 128 }
 0x3b1   :  { %v795_v30 = vpop.f32.mrf.mxu3 }
 0x3b2   :  { %821 = vxpose.xlu2.b32.cont [12/16] %v795_v30, 128 }
 0x3b9   :  { %v798_v5 = vpop.f32.mrf.mxu3 }
 0x3ba   :  { %822 = vxpose.xlu2.b32.cont [13/16] %v798_v5, 128 }
 0x3c1   :  { %v801_v12 = vpop.f32.mrf.mxu3 }
 0x3c2   :  { %823 = vxpose.xlu2.b32.cont [14/16] %v801_v12, 128 }
 0x3c9   :  { %v804_v24 = vpop.f32.mrf.mxu3 }
 0x3ca   :  { %824 = vxpose.xlu2.b32.cont [15/16] %v804_v24, 128 }
 0x3d1   :  { %v807_v55 = vpop.f32.mrf.mxu3 }
 0x3d2   :  { %825 = vxpose.xlu2.b32.end [16/16] %v807_v55, 128 }
 0x3f3   :  { %v826_v46 = vpop.trf.xlu2 }
 0x3f4   :  { %842 = vst [vmem:[%s1673_s4] sm:$0xff] %v826_v46 }
 0x3fb   :  { %v827_v48 = vpop.trf.xlu2 }
 0x3fc   :  { %843 = vst [vmem:[%s1673_s4 + $0x8] sm:$0xff] %v827_v48 }
 0x403   :  { %v828_v60 = vpop.trf.xlu2 }
 0x404   :  { %844 = vst [vmem:[%s1673_s4 + $0x10] sm:$0xff] %v828_v60 }
 0x40b   :  { %v829_v17 = vpop.trf.xlu2 }
 0x40c   :  { %845 = vst [vmem:[%s1673_s4 + $0x18] sm:$0xff] %v829_v17 }
 0x413   :  { %v830_v4 = vpop.trf.xlu2 }
 0x414   :  { %846 = vst [vmem:[%s1673_s4 + $0x20] sm:$0xff] %v830_v4 }
 0x41b   :  { %v831_v18 = vpop.trf.xlu2 }
 0x41c   :  { %847 = vst [vmem:[%s1673_s4 + $0x28] sm:$0xff] %v831_v18 }
 0x423   :  { %v832_v63 = vpop.trf.xlu2 }
 0x424   :  { %848 = vst [vmem:[%s1673_s4 + $0x30] sm:$0xff] %v832_v63 }
 0x42b   :  { %v833_v6 = vpop.trf.xlu2 }
 0x42c   :  { %849 = vst [vmem:[%s1673_s4 + $0x38] sm:$0xff] %v833_v6 }
 0x433   :  { %v834_v21 = vpop.trf.xlu2 }
 0x434   :  { %850 = vst [vmem:[%s1673_s4 + $0x40] sm:$0xff] %v834_v21 }
 0x43b   :  { %v835_v11 = vpop.trf.xlu2 }
 0x43c   :  { %851 = vst [vmem:[%s1673_s4 + $0x48] sm:$0xff] %v835_v11 }
 0x443   :  { %v836_v40 = vpop.trf.xlu2 }
 0x444   :  { %852 = vst [vmem:[%s1673_s4 + $0x50] sm:$0xff] %v836_v40 }
 0x44b   :  { %v837_v58 = vpop.trf.xlu2 }
 0x44c   :  { %853 = vst [vmem:[%s1673_s4 + $0x58] sm:$0xff] %v837_v58 }
 0x453   :  { %v838_v10 = vpop.trf.xlu2 }
 0x454   :  { %854 = vst [vmem:[%s1673_s4 + $0x60] sm:$0xff] %v838_v10 }
 0x45b   :  { %v839_v13 = vpop.trf.xlu2 }
 0x45c   :  { %855 = vst [vmem:[%s1673_s4 + $0x68] sm:$0xff] %v839_v13 }
 0x463   :  { %v840_v23 = vpop.trf.xlu2 }
 0x464   :  { %856 = vst [vmem:[%s1673_s4 + $0x70] sm:$0xff] %v840_v23 }
 0x46b   :  { %v841_v38 = vpop.trf.xlu2 }
 0x46c   :  { %857 = vst [vmem:[%s1673_s4 + $0x78] sm:$0xff] %v841_v38 }
 0x46d   :  { %862 = vsyncpa [#allocation3], 1 }

</bundles_post_ra>
